<compile_context>
chip_gen: v5e
topology: v5e:2x2
jax: 0.10.0
libtpu: 0.0.40
codegen_flags: <defaults>
</compile_context>

<pallas_src>
import jax
import jax.numpy as jnp
from jax import lax
from jax.experimental import pallas as pl
from jax.experimental.pallas import tpu as pltpu


def _lstm_disc_kernel(gx_ref,      # (T_CHUNK, 4, B, H)  pre-activations x@W_ih + b (f32)
                      w_hh_ref,    # (4, H, H)           recurrent weights (matmul dtype)
                      fc_w_ref,    # (H, C)
                      fc_b_ref,    # (1, C)
                      out_ref,     # (B, C)
                      h_sc,        # VMEM (B, H) f32
                      c_sc):       # VMEM (B, H) f32
    chunk = pl.program_id(0)

    @pl.when(chunk == 0)
    def _():
        h_sc[...] = jnp.zeros_like(h_sc)
        c_sc[...] = jnp.zeros_like(c_sc)

    # Loop-invariant: load the recurrent weights once per chunk.
    w_hh = w_hh_ref[...]                 # (4, H, H)
    mm_dtype = w_hh.dtype
    t_chunk = gx_ref.shape[0]

    def step(tl, carry):
        h, c = carry                     # f32 state
        gx_t = gx_ref[tl]                # (4, B, H) f32, lane-aligned per gate
        h_mm = h.astype(mm_dtype)
        # PyTorch gate order [i, f, g, o]; each dot is (B,H)@(H,H) on the MXU.
        ri = jnp.dot(h_mm, w_hh[0], preferred_element_type=jnp.float32)
        rf = jnp.dot(h_mm, w_hh[1], preferred_element_type=jnp.float32)
        rg = jnp.dot(h_mm, w_hh[2], preferred_element_type=jnp.float32)
        ro = jnp.dot(h_mm, w_hh[3], preferred_element_type=jnp.float32)
        i_g = jax.nn.sigmoid(gx_t[0] + ri)
        f_g = jax.nn.sigmoid(gx_t[1] + rf)
        g_g = jnp.tanh(gx_t[2] + rg)
        o_g = jax.nn.sigmoid(gx_t[3] + ro)
        c_new = f_g * c + i_g * g_g
        h_new = o_g * jnp.tanh(c_new)
        return h_new, c_new

    h_fin, c_fin = lax.fori_loop(0, t_chunk, step, (h_sc[...], c_sc[...]),
                                 unroll=True)
    h_sc[...] = h_fin
    c_sc[...] = c_fin

    @pl.when(chunk == pl.num_programs(0) - 1)
    def _():
        logits = (jnp.dot(h_fin, fc_w_ref[...], preferred_element_type=jnp.float32)
                  + fc_b_ref[...])
        out_ref[...] = jax.nn.sigmoid(logits).astype(out_ref.dtype)


def _pick_time_chunk(seq_len, cap):
    """Largest divisor of seq_len that is <= cap (keeps the grid exact)."""
    best = 1
    for d in range(1, min(seq_len, cap) + 1):
        if seq_len % d == 0:
            best = d
    return best


def trajectory_discriminator_forward(x, params, *, matmul_dtype=jnp.float32,
                                     time_chunk_cap=32):
    """x: (batch, seq, input_size) float32, like the PyTorch module (batch_first)."""
    B, S, I = x.shape
    w_ih_p = params["w_ih_p"]   # (4, I, H)
    w_hh_p = params["w_hh_p"]   # (4, H, H)
    b_p = params["b_p"]         # (4, H)
    fc_w_t = params["fc_w_t"]   # (H, C)
    fc_b = params["fc_b"]       # (1, C)
    H = w_hh_p.shape[-1]
    C = fc_w_t.shape[1]

    # Pad batch to the f32 sublane granularity (8) so state vregs are dense.
    B_pad = max(8, -(-B // 8) * 8)
    if B_pad != B:
        x = jnp.pad(x, ((0, B_pad - B), (0, 0), (0, 0)))

    # Hoisted input projection: one large MXU-friendly GEMM instead of S tiny
    # ones inside the serial recurrence. Output layout (S, 4, B_pad, H) keeps
    # the gate split off the lane axis.
    gx = (jnp.einsum("bsi,kih->skbh",
                     x.astype(matmul_dtype), w_ih_p.astype(matmul_dtype),
                     preferred_element_type=jnp.float32)
          + b_p[None, :, None, :]).astype(jnp.float32)

    w_hh_mm = w_hh_p.astype(matmul_dtype)

    T_CHUNK = _pick_time_chunk(S, time_chunk_cap)
    grid = (S // T_CHUNK,)

    # Explicit VMEM budget (conservative double-buffer estimate, v7x headroom).
    mm_bytes = jnp.dtype(matmul_dtype).itemsize
    vmem_est = (2 * T_CHUNK * 4 * B_pad * H * 4      # pipelined gx chunks (f32)
                + 2 * 4 * H * H * mm_bytes           # w_hh
                + 2 * (H * C + C) * 4                # fc weights / bias
                + 2 * B_pad * H * 4                  # h/c scratch
                + 2 * B_pad * C * 4)                 # output block
    vmem_limit = int(min(max(4 * vmem_est, 8 << 20), 48 << 20))

    grid_spec = pltpu.PrefetchScalarGridSpec(
        num_scalar_prefetch=0,
        grid=grid,
        in_specs=[
            pl.BlockSpec((T_CHUNK, 4, B_pad, H), lambda t: (t, 0, 0, 0)),
            pl.BlockSpec((4, H, H), lambda t: (0, 0, 0)),
            pl.BlockSpec((H, C), lambda t: (0, 0)),
            pl.BlockSpec((1, C), lambda t: (0, 0)),
        ],
        out_specs=pl.BlockSpec((B_pad, C), lambda t: (0, 0)),
        scratch_shapes=[
            pltpu.VMEM((B_pad, H), jnp.float32),   # h state
            pltpu.VMEM((B_pad, H), jnp.float32),   # c state
        ],
    )

    out_full = pl.pallas_call(
        _lstm_disc_kernel,
        grid_spec=grid_spec,
        out_shape=jax.ShapeDtypeStruct((B_pad, C), jnp.float32),
        compiler_params=pltpu.CompilerParams(
            dimension_semantics=("arbitrary",),   # serial time recurrence
            vmem_limit_bytes=vmem_limit,
        ),
    )(gx, w_hh_mm, fc_w_t, fc_b)

    return out_full[:B]


def init_params(key, input_size, hidden_size, num_classes):
    """Deterministic init matching PyTorch nn.LSTM/nn.Linear U(-1/sqrt(H), 1/sqrt(H))."""
    k = jax.random.split(key, 6)
    H, I, C = hidden_size, input_size, num_classes
    bound = 1.0 / jnp.sqrt(jnp.float32(H))
    w_ih = jax.random.uniform(k[0], (4 * H, I), jnp.float32, -bound, bound)
    w_hh = jax.random.uniform(k[1], (4 * H, H), jnp.float32, -bound, bound)
    b_ih = jax.random.uniform(k[2], (4 * H,), jnp.float32, -bound, bound)
    b_hh = jax.random.uniform(k[3], (4 * H,), jnp.float32, -bound, bound)
    fc_w = jax.random.uniform(k[4], (C, H), jnp.float32, -bound, bound)
    fc_b = jax.random.uniform(k[5], (C,), jnp.float32, -bound, bound)
    return {
        # Gate-major packing, pre-transposed for (B, X) @ (X, H) matmuls.
        "w_ih_p": jnp.transpose(w_ih.reshape(4, H, I), (0, 2, 1)),  # (4, I, H)
        "w_hh_p": jnp.transpose(w_hh.reshape(4, H, H), (0, 2, 1)),  # (4, H, H)
        "b_p": (b_ih + b_hh).reshape(4, H),                         # (4, H)
        "fc_w_t": fc_w.T,                                           # (H, C)
        "fc_b": fc_b.reshape(1, C),                                 # (1, C)
    }


def _reference_forward(x, params):
    """Pure-JAX reference of the PyTorch forward (for a sanity check)."""
    B, S, I = x.shape
    w_ih_p, w_hh_p, b_p = params["w_ih_p"], params["w_hh_p"], params["b_p"]
    H = w_hh_p.shape[-1]
    h = jnp.zeros((B, H), jnp.float32)
    c = jnp.zeros((B, H), jnp.float32)
    for t in range(S):
        xt = x[:, t, :]
        i_g = jax.nn.sigmoid(xt @ w_ih_p[0] + h @ w_hh_p[0] + b_p[0])
        f_g = jax.nn.sigmoid(xt @ w_ih_p[1] + h @ w_hh_p[1] + b_p[1])
        g_g = jnp.tanh(xt @ w_ih_p[2] + h @ w_hh_p[2] + b_p[2])
        o_g = jax.nn.sigmoid(xt @ w_ih_p[3] + h @ w_hh_p[3] + b_p[3])
        c = f_g * c + i_g * g_g
        h = o_g * jnp.tanh(c)
    return jax.nn.sigmoid(h @ params["fc_w_t"] + params["fc_b"])


if __name__ == "__main__":
    batch, seq, input_size, hidden_size, num_classes = 2, 8, 4, 32, 2

    key = jax.random.PRNGKey(0)
    k_x, k_p = jax.random.split(key)
    x = jax.random.normal(k_x, (batch, seq, input_size), jnp.float32)
    params = init_params(k_p, input_size, hidden_size, num_classes)

    ref = _reference_forward(x, params)

    # f32 MXU operands: tight numerical check against the reference.
    probs = jax.block_until_ready(trajectory_discriminator_forward(x, params))
    assert probs.shape == (batch, num_classes)
    assert jnp.allclose(probs, ref, atol=1e-5, rtol=1e-5)

    # bf16 MXU operands (f32 state / nonlinearities): looser tolerance.
    probs_bf16 = jax.block_until_ready(
        trajectory_discriminator_forward(x, params, matmul_dtype=jnp.bfloat16))
    assert probs_bf16.shape == (batch, num_classes)
    assert jnp.allclose(probs_bf16, ref, atol=5e-2, rtol=5e-2)

    print("KERNEL_OK")
</pallas_src>

<mosaic_0001>
module attributes {stable_mosaic.version = 11 : i64} {
  func.func @_lstm_disc_kernel(%arg0: i32, %arg1: memref<8x4x8x32xf32, #tpu.memory_space<vmem>>, %arg2: memref<4x32x32xf32, #tpu.memory_space<vmem>>, %arg3: memref<32x2xf32, #tpu.memory_space<vmem>>, %arg4: memref<1x2xf32, #tpu.memory_space<vmem>>, %arg5: memref<8x2xf32, #tpu.memory_space<vmem>>, %arg6: memref<8x32xf32, #tpu.memory_space<vmem>>, %arg7: memref<8x32xf32, #tpu.memory_space<vmem>>) attributes {dimension_semantics = [#tpu.dimension_semantics<arbitrary>], iteration_bounds = array<i64: 1>, scalar_prefetch = 0 : i64, scratch_operands = 2 : i64, tpu.core_type = #tpu.core_type<tc>, window_params = [{transform_indices = @transform_0, window_bounds = array<i64: 8, 4, 8, 32>}, {pipeline_mode = #tpu.pipeline_mode<synchronous>, transform_indices = @transform_1, window_bounds = array<i64: 4, 32, 32>}, {pipeline_mode = #tpu.pipeline_mode<synchronous>, transform_indices = @transform_2, window_bounds = array<i64: 32, 2>}, {pipeline_mode = #tpu.pipeline_mode<synchronous>, transform_indices = @transform_3, window_bounds = array<i64: 1, 2>}, {pipeline_mode = #tpu.pipeline_mode<synchronous>, transform_indices = @transform_4, window_bounds = array<i64: 8, 2>}]} {
    %c0_i32 = arith.constant 0 : i32
    %0 = arith.cmpi eq, %arg0, %c0_i32 : i32
    %1 = arith.extui %0 : i1 to i32
    %c0_i32_0 = arith.constant 0 : i32
    %2 = arith.cmpi ne, %1, %c0_i32_0 : i32
    scf.if %2 {
      %cst_93 = arith.constant 0.000000e+00 : f32
      %395 = vector.broadcast %cst_93 : f32 to vector<8x32xf32>
      %c0_94 = arith.constant 0 : index
      %c0_95 = arith.constant 0 : index
      %396 = vector.load %arg6[%c0_94, %c0_95] : memref<8x32xf32, #tpu.memory_space<vmem>>, vector<8x32xf32>
      tpu.vector_store %arg6[%c0_94, %c0_95], %395 {strides = array<i32>} : memref<8x32xf32, #tpu.memory_space<vmem>>, vector<8x32xf32>,
      %cst_96 = arith.constant 0.000000e+00 : f32
      %397 = vector.broadcast %cst_96 : f32 to vector<8x32xf32>
      %c0_97 = arith.constant 0 : index
      %c0_98 = arith.constant 0 : index
      %398 = vector.load %arg7[%c0_97, %c0_98] : memref<8x32xf32, #tpu.memory_space<vmem>>, vector<8x32xf32>
      tpu.vector_store %arg7[%c0_97, %c0_98], %397 {strides = array<i32>} : memref<8x32xf32, #tpu.memory_space<vmem>>, vector<8x32xf32>,
    } else {
    }
    %c0 = arith.constant 0 : index
    %c0_1 = arith.constant 0 : index
    %c0_2 = arith.constant 0 : index
    %3 = vector.load %arg2[%c0, %c0_1, %c0_2] : memref<4x32x32xf32, #tpu.memory_space<vmem>>, vector<4x32x32xf32>
    %c0_3 = arith.constant 0 : index
    %c0_4 = arith.constant 0 : index
    %4 = vector.load %arg6[%c0_3, %c0_4] : memref<8x32xf32, #tpu.memory_space<vmem>>, vector<8x32xf32>
    %c0_5 = arith.constant 0 : index
    %c0_6 = arith.constant 0 : index
    %5 = vector.load %arg7[%c0_5, %c0_6] : memref<8x32xf32, #tpu.memory_space<vmem>>, vector<8x32xf32>
    %c0_i32_7 = arith.constant 0 : i32
    %6 = arith.index_cast %c0_i32_7 : i32 to index
    %c0_8 = arith.constant 0 : index
    %c0_9 = arith.constant 0 : index
    %c0_10 = arith.constant 0 : index
    %7 = vector.load %arg1[%6, %c0_8, %c0_9, %c0_10] : memref<8x4x8x32xf32, #tpu.memory_space<vmem>>, vector<1x4x8x32xf32>
    %8 = vector.shape_cast %7 : vector<1x4x8x32xf32> to vector<4x8x32xf32>
    %9 = vector.extract_strided_slice %3 {offsets = [0, 0, 0], sizes = [1, 32, 32], strides = [1, 1, 1]} : vector<4x32x32xf32> to vector<1x32x32xf32>
    %10 = vector.shape_cast %9 : vector<1x32x32xf32> to vector<32x32xf32>
    %cst = arith.constant dense<0.000000e+00> : vector<8x32xf32>
    %11 = tpu.matmul %4, %10, %cst {dimension_numbers = #tpu.dot_dimension_numbers<[1], [0], [0], [1], [0, 0, 1, 1], [], []>} : vector<8x32xf32>, vector<32x32xf32>, vector<8x32xf32> -> vector<8x32xf32>
    %12 = vector.extract_strided_slice %3 {offsets = [1, 0, 0], sizes = [1, 32, 32], strides = [1, 1, 1]} : vector<4x32x32xf32> to vector<1x32x32xf32>
    %13 = vector.shape_cast %12 : vector<1x32x32xf32> to vector<32x32xf32>
    %cst_11 = arith.constant dense<0.000000e+00> : vector<8x32xf32>
    %14 = tpu.matmul %4, %13, %cst_11 {dimension_numbers = #tpu.dot_dimension_numbers<[1], [0], [0], [1], [0, 0, 1, 1], [], []>} : vector<8x32xf32>, vector<32x32xf32>, vector<8x32xf32> -> vector<8x32xf32>
    %15 = vector.extract_strided_slice %3 {offsets = [2, 0, 0], sizes = [1, 32, 32], strides = [1, 1, 1]} : vector<4x32x32xf32> to vector<1x32x32xf32>
    %16 = vector.shape_cast %15 : vector<1x32x32xf32> to vector<32x32xf32>
    %cst_12 = arith.constant dense<0.000000e+00> : vector<8x32xf32>
    %17 = tpu.matmul %4, %16, %cst_12 {dimension_numbers = #tpu.dot_dimension_numbers<[1], [0], [0], [1], [0, 0, 1, 1], [], []>} : vector<8x32xf32>, vector<32x32xf32>, vector<8x32xf32> -> vector<8x32xf32>
    %18 = vector.extract_strided_slice %3 {offsets = [3, 0, 0], sizes = [1, 32, 32], strides = [1, 1, 1]} : vector<4x32x32xf32> to vector<1x32x32xf32>
    %19 = vector.shape_cast %18 : vector<1x32x32xf32> to vector<32x32xf32>
    %cst_13 = arith.constant dense<0.000000e+00> : vector<8x32xf32>
    %20 = tpu.matmul %4, %19, %cst_13 {dimension_numbers = #tpu.dot_dimension_numbers<[1], [0], [0], [1], [0, 0, 1, 1], [], []>} : vector<8x32xf32>, vector<32x32xf32>, vector<8x32xf32> -> vector<8x32xf32>
    %21 = vector.extract_strided_slice %8 {offsets = [0, 0, 0], sizes = [1, 8, 32], strides = [1, 1, 1]} : vector<4x8x32xf32> to vector<1x8x32xf32>
    %22 = vector.shape_cast %21 : vector<1x8x32xf32> to vector<8x32xf32>
    %23 = arith.addf %22, %11 : vector<8x32xf32>
    %24 = arith.negf %23 : vector<8x32xf32>
    %25 = math.exp %24 : vector<8x32xf32>
    %cst_14 = arith.constant 1.000000e+00 : f32
    %26 = vector.broadcast %cst_14 : f32 to vector<8x32xf32>
    %27 = arith.addf %26, %25 : vector<8x32xf32>
    %28 = arith.divf %26, %27 : vector<8x32xf32>
    %29 = vector.extract_strided_slice %8 {offsets = [1, 0, 0], sizes = [1, 8, 32], strides = [1, 1, 1]} : vector<4x8x32xf32> to vector<1x8x32xf32>
    %30 = vector.shape_cast %29 : vector<1x8x32xf32> to vector<8x32xf32>
    %31 = arith.addf %30, %14 : vector<8x32xf32>
    %32 = arith.negf %31 : vector<8x32xf32>
    %33 = math.exp %32 : vector<8x32xf32>
    %cst_15 = arith.constant 1.000000e+00 : f32
    %34 = vector.broadcast %cst_15 : f32 to vector<8x32xf32>
    %35 = arith.addf %34, %33 : vector<8x32xf32>
    %36 = arith.divf %34, %35 : vector<8x32xf32>
    %37 = vector.extract_strided_slice %8 {offsets = [2, 0, 0], sizes = [1, 8, 32], strides = [1, 1, 1]} : vector<4x8x32xf32> to vector<1x8x32xf32>
    %38 = vector.shape_cast %37 : vector<1x8x32xf32> to vector<8x32xf32>
    %39 = arith.addf %38, %17 : vector<8x32xf32>
    %40 = math.tanh %39 : vector<8x32xf32>
    %41 = vector.extract_strided_slice %8 {offsets = [3, 0, 0], sizes = [1, 8, 32], strides = [1, 1, 1]} : vector<4x8x32xf32> to vector<1x8x32xf32>
    %42 = vector.shape_cast %41 : vector<1x8x32xf32> to vector<8x32xf32>
    %43 = arith.addf %42, %20 : vector<8x32xf32>
    %44 = arith.negf %43 : vector<8x32xf32>
    %45 = math.exp %44 : vector<8x32xf32>
    %cst_16 = arith.constant 1.000000e+00 : f32
    %46 = vector.broadcast %cst_16 : f32 to vector<8x32xf32>
    %47 = arith.addf %46, %45 : vector<8x32xf32>
    %48 = arith.divf %46, %47 : vector<8x32xf32>
    %49 = arith.mulf %36, %5 : vector<8x32xf32>
    %50 = arith.mulf %28, %40 : vector<8x32xf32>
    %51 = arith.addf %49, %50 : vector<8x32xf32>
    %52 = math.tanh %51 : vector<8x32xf32>
    %53 = arith.mulf %48, %52 : vector<8x32xf32>
    %c1_i32 = arith.constant 1 : i32
    %54 = arith.index_cast %c1_i32 : i32 to index
    %c0_17 = arith.constant 0 : index
    %c0_18 = arith.constant 0 : index
    %c0_19 = arith.constant 0 : index
    %55 = vector.load %arg1[%54, %c0_17, %c0_18, %c0_19] : memref<8x4x8x32xf32, #tpu.memory_space<vmem>>, vector<1x4x8x32xf32>
    %56 = vector.shape_cast %55 : vector<1x4x8x32xf32> to vector<4x8x32xf32>
    %57 = vector.extract_strided_slice %3 {offsets = [0, 0, 0], sizes = [1, 32, 32], strides = [1, 1, 1]} : vector<4x32x32xf32> to vector<1x32x32xf32>
    %58 = vector.shape_cast %57 : vector<1x32x32xf32> to vector<32x32xf32>
    %cst_20 = arith.constant dense<0.000000e+00> : vector<8x32xf32>
    %59 = tpu.matmul %53, %58, %cst_20 {dimension_numbers = #tpu.dot_dimension_numbers<[1], [0], [0], [1], [0, 0, 1, 1], [], []>} : vector<8x32xf32>, vector<32x32xf32>, vector<8x32xf32> -> vector<8x32xf32>
    %60 = vector.extract_strided_slice %3 {offsets = [1, 0, 0], sizes = [1, 32, 32], strides = [1, 1, 1]} : vector<4x32x32xf32> to vector<1x32x32xf32>
    %61 = vector.shape_cast %60 : vector<1x32x32xf32> to vector<32x32xf32>
    %cst_21 = arith.constant dense<0.000000e+00> : vector<8x32xf32>
    %62 = tpu.matmul %53, %61, %cst_21 {dimension_numbers = #tpu.dot_dimension_numbers<[1], [0], [0], [1], [0, 0, 1, 1], [], []>} : vector<8x32xf32>, vector<32x32xf32>, vector<8x32xf32> -> vector<8x32xf32>
    %63 = vector.extract_strided_slice %3 {offsets = [2, 0, 0], sizes = [1, 32, 32], strides = [1, 1, 1]} : vector<4x32x32xf32> to vector<1x32x32xf32>
    %64 = vector.shape_cast %63 : vector<1x32x32xf32> to vector<32x32xf32>
    %cst_22 = arith.constant dense<0.000000e+00> : vector<8x32xf32>
    %65 = tpu.matmul %53, %64, %cst_22 {dimension_numbers = #tpu.dot_dimension_numbers<[1], [0], [0], [1], [0, 0, 1, 1], [], []>} : vector<8x32xf32>, vector<32x32xf32>, vector<8x32xf32> -> vector<8x32xf32>
    %66 = vector.extract_strided_slice %3 {offsets = [3, 0, 0], sizes = [1, 32, 32], strides = [1, 1, 1]} : vector<4x32x32xf32> to vector<1x32x32xf32>
    %67 = vector.shape_cast %66 : vector<1x32x32xf32> to vector<32x32xf32>
    %cst_23 = arith.constant dense<0.000000e+00> : vector<8x32xf32>
    %68 = tpu.matmul %53, %67, %cst_23 {dimension_numbers = #tpu.dot_dimension_numbers<[1], [0], [0], [1], [0, 0, 1, 1], [], []>} : vector<8x32xf32>, vector<32x32xf32>, vector<8x32xf32> -> vector<8x32xf32>
    %69 = vector.extract_strided_slice %56 {offsets = [0, 0, 0], sizes = [1, 8, 32], strides = [1, 1, 1]} : vector<4x8x32xf32> to vector<1x8x32xf32>
    %70 = vector.shape_cast %69 : vector<1x8x32xf32> to vector<8x32xf32>
    %71 = arith.addf %70, %59 : vector<8x32xf32>
    %72 = arith.negf %71 : vector<8x32xf32>
    %73 = math.exp %72 : vector<8x32xf32>
    %cst_24 = arith.constant 1.000000e+00 : f32
    %74 = vector.broadcast %cst_24 : f32 to vector<8x32xf32>
    %75 = arith.addf %74, %73 : vector<8x32xf32>
    %76 = arith.divf %74, %75 : vector<8x32xf32>
    %77 = vector.extract_strided_slice %56 {offsets = [1, 0, 0], sizes = [1, 8, 32], strides = [1, 1, 1]} : vector<4x8x32xf32> to vector<1x8x32xf32>
    %78 = vector.shape_cast %77 : vector<1x8x32xf32> to vector<8x32xf32>
    %79 = arith.addf %78, %62 : vector<8x32xf32>
    %80 = arith.negf %79 : vector<8x32xf32>
    %81 = math.exp %80 : vector<8x32xf32>
    %cst_25 = arith.constant 1.000000e+00 : f32
    %82 = vector.broadcast %cst_25 : f32 to vector<8x32xf32>
    %83 = arith.addf %82, %81 : vector<8x32xf32>
    %84 = arith.divf %82, %83 : vector<8x32xf32>
    %85 = vector.extract_strided_slice %56 {offsets = [2, 0, 0], sizes = [1, 8, 32], strides = [1, 1, 1]} : vector<4x8x32xf32> to vector<1x8x32xf32>
    %86 = vector.shape_cast %85 : vector<1x8x32xf32> to vector<8x32xf32>
    %87 = arith.addf %86, %65 : vector<8x32xf32>
    %88 = math.tanh %87 : vector<8x32xf32>
    %89 = vector.extract_strided_slice %56 {offsets = [3, 0, 0], sizes = [1, 8, 32], strides = [1, 1, 1]} : vector<4x8x32xf32> to vector<1x8x32xf32>
    %90 = vector.shape_cast %89 : vector<1x8x32xf32> to vector<8x32xf32>
    %91 = arith.addf %90, %68 : vector<8x32xf32>
    %92 = arith.negf %91 : vector<8x32xf32>
    %93 = math.exp %92 : vector<8x32xf32>
    %cst_26 = arith.constant 1.000000e+00 : f32
    %94 = vector.broadcast %cst_26 : f32 to vector<8x32xf32>
    %95 = arith.addf %94, %93 : vector<8x32xf32>
    %96 = arith.divf %94, %95 : vector<8x32xf32>
    %97 = arith.mulf %84, %51 : vector<8x32xf32>
    %98 = arith.mulf %76, %88 : vector<8x32xf32>
    %99 = arith.addf %97, %98 : vector<8x32xf32>
    %100 = math.tanh %99 : vector<8x32xf32>
    %101 = arith.mulf %96, %100 : vector<8x32xf32>
    %c2_i32 = arith.constant 2 : i32
    %102 = arith.index_cast %c2_i32 : i32 to index
    %c0_27 = arith.constant 0 : index
    %c0_28 = arith.constant 0 : index
    %c0_29 = arith.constant 0 : index
    %103 = vector.load %arg1[%102, %c0_27, %c0_28, %c0_29] : memref<8x4x8x32xf32, #tpu.memory_space<vmem>>, vector<1x4x8x32xf32>
    %104 = vector.shape_cast %103 : vector<1x4x8x32xf32> to vector<4x8x32xf32>
    %105 = vector.extract_strided_slice %3 {offsets = [0, 0, 0], sizes = [1, 32, 32], strides = [1, 1, 1]} : vector<4x32x32xf32> to vector<1x32x32xf32>
    %106 = vector.shape_cast %105 : vector<1x32x32xf32> to vector<32x32xf32>
    %cst_30 = arith.constant dense<0.000000e+00> : vector<8x32xf32>
    %107 = tpu.matmul %101, %106, %cst_30 {dimension_numbers = #tpu.dot_dimension_numbers<[1], [0], [0], [1], [0, 0, 1, 1], [], []>} : vector<8x32xf32>, vector<32x32xf32>, vector<8x32xf32> -> vector<8x32xf32>
    %108 = vector.extract_strided_slice %3 {offsets = [1, 0, 0], sizes = [1, 32, 32], strides = [1, 1, 1]} : vector<4x32x32xf32> to vector<1x32x32xf32>
    %109 = vector.shape_cast %108 : vector<1x32x32xf32> to vector<32x32xf32>
    %cst_31 = arith.constant dense<0.000000e+00> : vector<8x32xf32>
    %110 = tpu.matmul %101, %109, %cst_31 {dimension_numbers = #tpu.dot_dimension_numbers<[1], [0], [0], [1], [0, 0, 1, 1], [], []>} : vector<8x32xf32>, vector<32x32xf32>, vector<8x32xf32> -> vector<8x32xf32>
    %111 = vector.extract_strided_slice %3 {offsets = [2, 0, 0], sizes = [1, 32, 32], strides = [1, 1, 1]} : vector<4x32x32xf32> to vector<1x32x32xf32>
    %112 = vector.shape_cast %111 : vector<1x32x32xf32> to vector<32x32xf32>
    %cst_32 = arith.constant dense<0.000000e+00> : vector<8x32xf32>
    %113 = tpu.matmul %101, %112, %cst_32 {dimension_numbers = #tpu.dot_dimension_numbers<[1], [0], [0], [1], [0, 0, 1, 1], [], []>} : vector<8x32xf32>, vector<32x32xf32>, vector<8x32xf32> -> vector<8x32xf32>
    %114 = vector.extract_strided_slice %3 {offsets = [3, 0, 0], sizes = [1, 32, 32], strides = [1, 1, 1]} : vector<4x32x32xf32> to vector<1x32x32xf32>
    %115 = vector.shape_cast %114 : vector<1x32x32xf32> to vector<32x32xf32>
    %cst_33 = arith.constant dense<0.000000e+00> : vector<8x32xf32>
    %116 = tpu.matmul %101, %115, %cst_33 {dimension_numbers = #tpu.dot_dimension_numbers<[1], [0], [0], [1], [0, 0, 1, 1], [], []>} : vector<8x32xf32>, vector<32x32xf32>, vector<8x32xf32> -> vector<8x32xf32>
    %117 = vector.extract_strided_slice %104 {offsets = [0, 0, 0], sizes = [1, 8, 32], strides = [1, 1, 1]} : vector<4x8x32xf32> to vector<1x8x32xf32>
    %118 = vector.shape_cast %117 : vector<1x8x32xf32> to vector<8x32xf32>
    %119 = arith.addf %118, %107 : vector<8x32xf32>
    %120 = arith.negf %119 : vector<8x32xf32>
    %121 = math.exp %120 : vector<8x32xf32>
    %cst_34 = arith.constant 1.000000e+00 : f32
    %122 = vector.broadcast %cst_34 : f32 to vector<8x32xf32>
    %123 = arith.addf %122, %121 : vector<8x32xf32>
    %124 = arith.divf %122, %123 : vector<8x32xf32>
    %125 = vector.extract_strided_slice %104 {offsets = [1, 0, 0], sizes = [1, 8, 32], strides = [1, 1, 1]} : vector<4x8x32xf32> to vector<1x8x32xf32>
    %126 = vector.shape_cast %125 : vector<1x8x32xf32> to vector<8x32xf32>
    %127 = arith.addf %126, %110 : vector<8x32xf32>
    %128 = arith.negf %127 : vector<8x32xf32>
    %129 = math.exp %128 : vector<8x32xf32>
    %cst_35 = arith.constant 1.000000e+00 : f32
    %130 = vector.broadcast %cst_35 : f32 to vector<8x32xf32>
    %131 = arith.addf %130, %129 : vector<8x32xf32>
    %132 = arith.divf %130, %131 : vector<8x32xf32>
    %133 = vector.extract_strided_slice %104 {offsets = [2, 0, 0], sizes = [1, 8, 32], strides = [1, 1, 1]} : vector<4x8x32xf32> to vector<1x8x32xf32>
    %134 = vector.shape_cast %133 : vector<1x8x32xf32> to vector<8x32xf32>
    %135 = arith.addf %134, %113 : vector<8x32xf32>
    %136 = math.tanh %135 : vector<8x32xf32>
    %137 = vector.extract_strided_slice %104 {offsets = [3, 0, 0], sizes = [1, 8, 32], strides = [1, 1, 1]} : vector<4x8x32xf32> to vector<1x8x32xf32>
    %138 = vector.shape_cast %137 : vector<1x8x32xf32> to vector<8x32xf32>
    %139 = arith.addf %138, %116 : vector<8x32xf32>
    %140 = arith.negf %139 : vector<8x32xf32>
    %141 = math.exp %140 : vector<8x32xf32>
    %cst_36 = arith.constant 1.000000e+00 : f32
    %142 = vector.broadcast %cst_36 : f32 to vector<8x32xf32>
    %143 = arith.addf %142, %141 : vector<8x32xf32>
    %144 = arith.divf %142, %143 : vector<8x32xf32>
    %145 = arith.mulf %132, %99 : vector<8x32xf32>
    %146 = arith.mulf %124, %136 : vector<8x32xf32>
    %147 = arith.addf %145, %146 : vector<8x32xf32>
    %148 = math.tanh %147 : vector<8x32xf32>
    %149 = arith.mulf %144, %148 : vector<8x32xf32>
    %c3_i32 = arith.constant 3 : i32
    %150 = arith.index_cast %c3_i32 : i32 to index
    %c0_37 = arith.constant 0 : index
    %c0_38 = arith.constant 0 : index
    %c0_39 = arith.constant 0 : index
    %151 = vector.load %arg1[%150, %c0_37, %c0_38, %c0_39] : memref<8x4x8x32xf32, #tpu.memory_space<vmem>>, vector<1x4x8x32xf32>
    %152 = vector.shape_cast %151 : vector<1x4x8x32xf32> to vector<4x8x32xf32>
    %153 = vector.extract_strided_slice %3 {offsets = [0, 0, 0], sizes = [1, 32, 32], strides = [1, 1, 1]} : vector<4x32x32xf32> to vector<1x32x32xf32>
    %154 = vector.shape_cast %153 : vector<1x32x32xf32> to vector<32x32xf32>
    %cst_40 = arith.constant dense<0.000000e+00> : vector<8x32xf32>
    %155 = tpu.matmul %149, %154, %cst_40 {dimension_numbers = #tpu.dot_dimension_numbers<[1], [0], [0], [1], [0, 0, 1, 1], [], []>} : vector<8x32xf32>, vector<32x32xf32>, vector<8x32xf32> -> vector<8x32xf32>
    %156 = vector.extract_strided_slice %3 {offsets = [1, 0, 0], sizes = [1, 32, 32], strides = [1, 1, 1]} : vector<4x32x32xf32> to vector<1x32x32xf32>
    %157 = vector.shape_cast %156 : vector<1x32x32xf32> to vector<32x32xf32>
    %cst_41 = arith.constant dense<0.000000e+00> : vector<8x32xf32>
    %158 = tpu.matmul %149, %157, %cst_41 {dimension_numbers = #tpu.dot_dimension_numbers<[1], [0], [0], [1], [0, 0, 1, 1], [], []>} : vector<8x32xf32>, vector<32x32xf32>, vector<8x32xf32> -> vector<8x32xf32>
    %159 = vector.extract_strided_slice %3 {offsets = [2, 0, 0], sizes = [1, 32, 32], strides = [1, 1, 1]} : vector<4x32x32xf32> to vector<1x32x32xf32>
    %160 = vector.shape_cast %159 : vector<1x32x32xf32> to vector<32x32xf32>
    %cst_42 = arith.constant dense<0.000000e+00> : vector<8x32xf32>
    %161 = tpu.matmul %149, %160, %cst_42 {dimension_numbers = #tpu.dot_dimension_numbers<[1], [0], [0], [1], [0, 0, 1, 1], [], []>} : vector<8x32xf32>, vector<32x32xf32>, vector<8x32xf32> -> vector<8x32xf32>
    %162 = vector.extract_strided_slice %3 {offsets = [3, 0, 0], sizes = [1, 32, 32], strides = [1, 1, 1]} : vector<4x32x32xf32> to vector<1x32x32xf32>
    %163 = vector.shape_cast %162 : vector<1x32x32xf32> to vector<32x32xf32>
    %cst_43 = arith.constant dense<0.000000e+00> : vector<8x32xf32>
    %164 = tpu.matmul %149, %163, %cst_43 {dimension_numbers = #tpu.dot_dimension_numbers<[1], [0], [0], [1], [0, 0, 1, 1], [], []>} : vector<8x32xf32>, vector<32x32xf32>, vector<8x32xf32> -> vector<8x32xf32>
    %165 = vector.extract_strided_slice %152 {offsets = [0, 0, 0], sizes = [1, 8, 32], strides = [1, 1, 1]} : vector<4x8x32xf32> to vector<1x8x32xf32>
    %166 = vector.shape_cast %165 : vector<1x8x32xf32> to vector<8x32xf32>
    %167 = arith.addf %166, %155 : vector<8x32xf32>
    %168 = arith.negf %167 : vector<8x32xf32>
    %169 = math.exp %168 : vector<8x32xf32>
    %cst_44 = arith.constant 1.000000e+00 : f32
    %170 = vector.broadcast %cst_44 : f32 to vector<8x32xf32>
    %171 = arith.addf %170, %169 : vector<8x32xf32>
    %172 = arith.divf %170, %171 : vector<8x32xf32>
    %173 = vector.extract_strided_slice %152 {offsets = [1, 0, 0], sizes = [1, 8, 32], strides = [1, 1, 1]} : vector<4x8x32xf32> to vector<1x8x32xf32>
    %174 = vector.shape_cast %173 : vector<1x8x32xf32> to vector<8x32xf32>
    %175 = arith.addf %174, %158 : vector<8x32xf32>
    %176 = arith.negf %175 : vector<8x32xf32>
    %177 = math.exp %176 : vector<8x32xf32>
    %cst_45 = arith.constant 1.000000e+00 : f32
    %178 = vector.broadcast %cst_45 : f32 to vector<8x32xf32>
    %179 = arith.addf %178, %177 : vector<8x32xf32>
    %180 = arith.divf %178, %179 : vector<8x32xf32>
    %181 = vector.extract_strided_slice %152 {offsets = [2, 0, 0], sizes = [1, 8, 32], strides = [1, 1, 1]} : vector<4x8x32xf32> to vector<1x8x32xf32>
    %182 = vector.shape_cast %181 : vector<1x8x32xf32> to vector<8x32xf32>
    %183 = arith.addf %182, %161 : vector<8x32xf32>
    %184 = math.tanh %183 : vector<8x32xf32>
    %185 = vector.extract_strided_slice %152 {offsets = [3, 0, 0], sizes = [1, 8, 32], strides = [1, 1, 1]} : vector<4x8x32xf32> to vector<1x8x32xf32>
    %186 = vector.shape_cast %185 : vector<1x8x32xf32> to vector<8x32xf32>
    %187 = arith.addf %186, %164 : vector<8x32xf32>
    %188 = arith.negf %187 : vector<8x32xf32>
    %189 = math.exp %188 : vector<8x32xf32>
    %cst_46 = arith.constant 1.000000e+00 : f32
    %190 = vector.broadcast %cst_46 : f32 to vector<8x32xf32>
    %191 = arith.addf %190, %189 : vector<8x32xf32>
    %192 = arith.divf %190, %191 : vector<8x32xf32>
    %193 = arith.mulf %180, %147 : vector<8x32xf32>
    %194 = arith.mulf %172, %184 : vector<8x32xf32>
    %195 = arith.addf %193, %194 : vector<8x32xf32>
    %196 = math.tanh %195 : vector<8x32xf32>
    %197 = arith.mulf %192, %196 : vector<8x32xf32>
    %c4_i32 = arith.constant 4 : i32
    %198 = arith.index_cast %c4_i32 : i32 to index
    %c0_47 = arith.constant 0 : index
    %c0_48 = arith.constant 0 : index
    %c0_49 = arith.constant 0 : index
    %199 = vector.load %arg1[%198, %c0_47, %c0_48, %c0_49] : memref<8x4x8x32xf32, #tpu.memory_space<vmem>>, vector<1x4x8x32xf32>
    %200 = vector.shape_cast %199 : vector<1x4x8x32xf32> to vector<4x8x32xf32>
    %201 = vector.extract_strided_slice %3 {offsets = [0, 0, 0], sizes = [1, 32, 32], strides = [1, 1, 1]} : vector<4x32x32xf32> to vector<1x32x32xf32>
    %202 = vector.shape_cast %201 : vector<1x32x32xf32> to vector<32x32xf32>
    %cst_50 = arith.constant dense<0.000000e+00> : vector<8x32xf32>
    %203 = tpu.matmul %197, %202, %cst_50 {dimension_numbers = #tpu.dot_dimension_numbers<[1], [0], [0], [1], [0, 0, 1, 1], [], []>} : vector<8x32xf32>, vector<32x32xf32>, vector<8x32xf32> -> vector<8x32xf32>
    %204 = vector.extract_strided_slice %3 {offsets = [1, 0, 0], sizes = [1, 32, 32], strides = [1, 1, 1]} : vector<4x32x32xf32> to vector<1x32x32xf32>
    %205 = vector.shape_cast %204 : vector<1x32x32xf32> to vector<32x32xf32>
    %cst_51 = arith.constant dense<0.000000e+00> : vector<8x32xf32>
    %206 = tpu.matmul %197, %205, %cst_51 {dimension_numbers = #tpu.dot_dimension_numbers<[1], [0], [0], [1], [0, 0, 1, 1], [], []>} : vector<8x32xf32>, vector<32x32xf32>, vector<8x32xf32> -> vector<8x32xf32>
    %207 = vector.extract_strided_slice %3 {offsets = [2, 0, 0], sizes = [1, 32, 32], strides = [1, 1, 1]} : vector<4x32x32xf32> to vector<1x32x32xf32>
    %208 = vector.shape_cast %207 : vector<1x32x32xf32> to vector<32x32xf32>
    %cst_52 = arith.constant dense<0.000000e+00> : vector<8x32xf32>
    %209 = tpu.matmul %197, %208, %cst_52 {dimension_numbers = #tpu.dot_dimension_numbers<[1], [0], [0], [1], [0, 0, 1, 1], [], []>} : vector<8x32xf32>, vector<32x32xf32>, vector<8x32xf32> -> vector<8x32xf32>
    %210 = vector.extract_strided_slice %3 {offsets = [3, 0, 0], sizes = [1, 32, 32], strides = [1, 1, 1]} : vector<4x32x32xf32> to vector<1x32x32xf32>
    %211 = vector.shape_cast %210 : vector<1x32x32xf32> to vector<32x32xf32>
    %cst_53 = arith.constant dense<0.000000e+00> : vector<8x32xf32>
    %212 = tpu.matmul %197, %211, %cst_53 {dimension_numbers = #tpu.dot_dimension_numbers<[1], [0], [0], [1], [0, 0, 1, 1], [], []>} : vector<8x32xf32>, vector<32x32xf32>, vector<8x32xf32> -> vector<8x32xf32>
    %213 = vector.extract_strided_slice %200 {offsets = [0, 0, 0], sizes = [1, 8, 32], strides = [1, 1, 1]} : vector<4x8x32xf32> to vector<1x8x32xf32>
    %214 = vector.shape_cast %213 : vector<1x8x32xf32> to vector<8x32xf32>
    %215 = arith.addf %214, %203 : vector<8x32xf32>
    %216 = arith.negf %215 : vector<8x32xf32>
    %217 = math.exp %216 : vector<8x32xf32>
    %cst_54 = arith.constant 1.000000e+00 : f32
    %218 = vector.broadcast %cst_54 : f32 to vector<8x32xf32>
    %219 = arith.addf %218, %217 : vector<8x32xf32>
    %220 = arith.divf %218, %219 : vector<8x32xf32>
    %221 = vector.extract_strided_slice %200 {offsets = [1, 0, 0], sizes = [1, 8, 32], strides = [1, 1, 1]} : vector<4x8x32xf32> to vector<1x8x32xf32>
    %222 = vector.shape_cast %221 : vector<1x8x32xf32> to vector<8x32xf32>
    %223 = arith.addf %222, %206 : vector<8x32xf32>
    %224 = arith.negf %223 : vector<8x32xf32>
    %225 = math.exp %224 : vector<8x32xf32>
    %cst_55 = arith.constant 1.000000e+00 : f32
    %226 = vector.broadcast %cst_55 : f32 to vector<8x32xf32>
    %227 = arith.addf %226, %225 : vector<8x32xf32>
    %228 = arith.divf %226, %227 : vector<8x32xf32>
    %229 = vector.extract_strided_slice %200 {offsets = [2, 0, 0], sizes = [1, 8, 32], strides = [1, 1, 1]} : vector<4x8x32xf32> to vector<1x8x32xf32>
    %230 = vector.shape_cast %229 : vector<1x8x32xf32> to vector<8x32xf32>
    %231 = arith.addf %230, %209 : vector<8x32xf32>
    %232 = math.tanh %231 : vector<8x32xf32>
    %233 = vector.extract_strided_slice %200 {offsets = [3, 0, 0], sizes = [1, 8, 32], strides = [1, 1, 1]} : vector<4x8x32xf32> to vector<1x8x32xf32>
    %234 = vector.shape_cast %233 : vector<1x8x32xf32> to vector<8x32xf32>
    %235 = arith.addf %234, %212 : vector<8x32xf32>
    %236 = arith.negf %235 : vector<8x32xf32>
    %237 = math.exp %236 : vector<8x32xf32>
    %cst_56 = arith.constant 1.000000e+00 : f32
    %238 = vector.broadcast %cst_56 : f32 to vector<8x32xf32>
    %239 = arith.addf %238, %237 : vector<8x32xf32>
    %240 = arith.divf %238, %239 : vector<8x32xf32>
    %241 = arith.mulf %228, %195 : vector<8x32xf32>
    %242 = arith.mulf %220, %232 : vector<8x32xf32>
    %243 = arith.addf %241, %242 : vector<8x32xf32>
    %244 = math.tanh %243 : vector<8x32xf32>
    %245 = arith.mulf %240, %244 : vector<8x32xf32>
    %c5_i32 = arith.constant 5 : i32
    %246 = arith.index_cast %c5_i32 : i32 to index
    %c0_57 = arith.constant 0 : index
    %c0_58 = arith.constant 0 : index
    %c0_59 = arith.constant 0 : index
    %247 = vector.load %arg1[%246, %c0_57, %c0_58, %c0_59] : memref<8x4x8x32xf32, #tpu.memory_space<vmem>>, vector<1x4x8x32xf32>
    %248 = vector.shape_cast %247 : vector<1x4x8x32xf32> to vector<4x8x32xf32>
    %249 = vector.extract_strided_slice %3 {offsets = [0, 0, 0], sizes = [1, 32, 32], strides = [1, 1, 1]} : vector<4x32x32xf32> to vector<1x32x32xf32>
    %250 = vector.shape_cast %249 : vector<1x32x32xf32> to vector<32x32xf32>
    %cst_60 = arith.constant dense<0.000000e+00> : vector<8x32xf32>
    %251 = tpu.matmul %245, %250, %cst_60 {dimension_numbers = #tpu.dot_dimension_numbers<[1], [0], [0], [1], [0, 0, 1, 1], [], []>} : vector<8x32xf32>, vector<32x32xf32>, vector<8x32xf32> -> vector<8x32xf32>
    %252 = vector.extract_strided_slice %3 {offsets = [1, 0, 0], sizes = [1, 32, 32], strides = [1, 1, 1]} : vector<4x32x32xf32> to vector<1x32x32xf32>
    %253 = vector.shape_cast %252 : vector<1x32x32xf32> to vector<32x32xf32>
    %cst_61 = arith.constant dense<0.000000e+00> : vector<8x32xf32>
    %254 = tpu.matmul %245, %253, %cst_61 {dimension_numbers = #tpu.dot_dimension_numbers<[1], [0], [0], [1], [0, 0, 1, 1], [], []>} : vector<8x32xf32>, vector<32x32xf32>, vector<8x32xf32> -> vector<8x32xf32>
    %255 = vector.extract_strided_slice %3 {offsets = [2, 0, 0], sizes = [1, 32, 32], strides = [1, 1, 1]} : vector<4x32x32xf32> to vector<1x32x32xf32>
    %256 = vector.shape_cast %255 : vector<1x32x32xf32> to vector<32x32xf32>
    %cst_62 = arith.constant dense<0.000000e+00> : vector<8x32xf32>
    %257 = tpu.matmul %245, %256, %cst_62 {dimension_numbers = #tpu.dot_dimension_numbers<[1], [0], [0], [1], [0, 0, 1, 1], [], []>} : vector<8x32xf32>, vector<32x32xf32>, vector<8x32xf32> -> vector<8x32xf32>
    %258 = vector.extract_strided_slice %3 {offsets = [3, 0, 0], sizes = [1, 32, 32], strides = [1, 1, 1]} : vector<4x32x32xf32> to vector<1x32x32xf32>
    %259 = vector.shape_cast %258 : vector<1x32x32xf32> to vector<32x32xf32>
    %cst_63 = arith.constant dense<0.000000e+00> : vector<8x32xf32>
    %260 = tpu.matmul %245, %259, %cst_63 {dimension_numbers = #tpu.dot_dimension_numbers<[1], [0], [0], [1], [0, 0, 1, 1], [], []>} : vector<8x32xf32>, vector<32x32xf32>, vector<8x32xf32> -> vector<8x32xf32>
    %261 = vector.extract_strided_slice %248 {offsets = [0, 0, 0], sizes = [1, 8, 32], strides = [1, 1, 1]} : vector<4x8x32xf32> to vector<1x8x32xf32>
    %262 = vector.shape_cast %261 : vector<1x8x32xf32> to vector<8x32xf32>
    %263 = arith.addf %262, %251 : vector<8x32xf32>
    %264 = arith.negf %263 : vector<8x32xf32>
    %265 = math.exp %264 : vector<8x32xf32>
    %cst_64 = arith.constant 1.000000e+00 : f32
    %266 = vector.broadcast %cst_64 : f32 to vector<8x32xf32>
    %267 = arith.addf %266, %265 : vector<8x32xf32>
    %268 = arith.divf %266, %267 : vector<8x32xf32>
    %269 = vector.extract_strided_slice %248 {offsets = [1, 0, 0], sizes = [1, 8, 32], strides = [1, 1, 1]} : vector<4x8x32xf32> to vector<1x8x32xf32>
    %270 = vector.shape_cast %269 : vector<1x8x32xf32> to vector<8x32xf32>
    %271 = arith.addf %270, %254 : vector<8x32xf32>
    %272 = arith.negf %271 : vector<8x32xf32>
    %273 = math.exp %272 : vector<8x32xf32>
    %cst_65 = arith.constant 1.000000e+00 : f32
    %274 = vector.broadcast %cst_65 : f32 to vector<8x32xf32>
    %275 = arith.addf %274, %273 : vector<8x32xf32>
    %276 = arith.divf %274, %275 : vector<8x32xf32>
    %277 = vector.extract_strided_slice %248 {offsets = [2, 0, 0], sizes = [1, 8, 32], strides = [1, 1, 1]} : vector<4x8x32xf32> to vector<1x8x32xf32>
    %278 = vector.shape_cast %277 : vector<1x8x32xf32> to vector<8x32xf32>
    %279 = arith.addf %278, %257 : vector<8x32xf32>
    %280 = math.tanh %279 : vector<8x32xf32>
    %281 = vector.extract_strided_slice %248 {offsets = [3, 0, 0], sizes = [1, 8, 32], strides = [1, 1, 1]} : vector<4x8x32xf32> to vector<1x8x32xf32>
    %282 = vector.shape_cast %281 : vector<1x8x32xf32> to vector<8x32xf32>
    %283 = arith.addf %282, %260 : vector<8x32xf32>
    %284 = arith.negf %283 : vector<8x32xf32>
    %285 = math.exp %284 : vector<8x32xf32>
    %cst_66 = arith.constant 1.000000e+00 : f32
    %286 = vector.broadcast %cst_66 : f32 to vector<8x32xf32>
    %287 = arith.addf %286, %285 : vector<8x32xf32>
    %288 = arith.divf %286, %287 : vector<8x32xf32>
    %289 = arith.mulf %276, %243 : vector<8x32xf32>
    %290 = arith.mulf %268, %280 : vector<8x32xf32>
    %291 = arith.addf %289, %290 : vector<8x32xf32>
    %292 = math.tanh %291 : vector<8x32xf32>
    %293 = arith.mulf %288, %292 : vector<8x32xf32>
    %c6_i32 = arith.constant 6 : i32
    %294 = arith.index_cast %c6_i32 : i32 to index
    %c0_67 = arith.constant 0 : index
    %c0_68 = arith.constant 0 : index
    %c0_69 = arith.constant 0 : index
    %295 = vector.load %arg1[%294, %c0_67, %c0_68, %c0_69] : memref<8x4x8x32xf32, #tpu.memory_space<vmem>>, vector<1x4x8x32xf32>
    %296 = vector.shape_cast %295 : vector<1x4x8x32xf32> to vector<4x8x32xf32>
    %297 = vector.extract_strided_slice %3 {offsets = [0, 0, 0], sizes = [1, 32, 32], strides = [1, 1, 1]} : vector<4x32x32xf32> to vector<1x32x32xf32>
    %298 = vector.shape_cast %297 : vector<1x32x32xf32> to vector<32x32xf32>
    %cst_70 = arith.constant dense<0.000000e+00> : vector<8x32xf32>
    %299 = tpu.matmul %293, %298, %cst_70 {dimension_numbers = #tpu.dot_dimension_numbers<[1], [0], [0], [1], [0, 0, 1, 1], [], []>} : vector<8x32xf32>, vector<32x32xf32>, vector<8x32xf32> -> vector<8x32xf32>
    %300 = vector.extract_strided_slice %3 {offsets = [1, 0, 0], sizes = [1, 32, 32], strides = [1, 1, 1]} : vector<4x32x32xf32> to vector<1x32x32xf32>
    %301 = vector.shape_cast %300 : vector<1x32x32xf32> to vector<32x32xf32>
    %cst_71 = arith.constant dense<0.000000e+00> : vector<8x32xf32>
    %302 = tpu.matmul %293, %301, %cst_71 {dimension_numbers = #tpu.dot_dimension_numbers<[1], [0], [0], [1], [0, 0, 1, 1], [], []>} : vector<8x32xf32>, vector<32x32xf32>, vector<8x32xf32> -> vector<8x32xf32>
    %303 = vector.extract_strided_slice %3 {offsets = [2, 0, 0], sizes = [1, 32, 32], strides = [1, 1, 1]} : vector<4x32x32xf32> to vector<1x32x32xf32>
    %304 = vector.shape_cast %303 : vector<1x32x32xf32> to vector<32x32xf32>
    %cst_72 = arith.constant dense<0.000000e+00> : vector<8x32xf32>
    %305 = tpu.matmul %293, %304, %cst_72 {dimension_numbers = #tpu.dot_dimension_numbers<[1], [0], [0], [1], [0, 0, 1, 1], [], []>} : vector<8x32xf32>, vector<32x32xf32>, vector<8x32xf32> -> vector<8x32xf32>
    %306 = vector.extract_strided_slice %3 {offsets = [3, 0, 0], sizes = [1, 32, 32], strides = [1, 1, 1]} : vector<4x32x32xf32> to vector<1x32x32xf32>
    %307 = vector.shape_cast %306 : vector<1x32x32xf32> to vector<32x32xf32>
    %cst_73 = arith.constant dense<0.000000e+00> : vector<8x32xf32>
    %308 = tpu.matmul %293, %307, %cst_73 {dimension_numbers = #tpu.dot_dimension_numbers<[1], [0], [0], [1], [0, 0, 1, 1], [], []>} : vector<8x32xf32>, vector<32x32xf32>, vector<8x32xf32> -> vector<8x32xf32>
    %309 = vector.extract_strided_slice %296 {offsets = [0, 0, 0], sizes = [1, 8, 32], strides = [1, 1, 1]} : vector<4x8x32xf32> to vector<1x8x32xf32>
    %310 = vector.shape_cast %309 : vector<1x8x32xf32> to vector<8x32xf32>
    %311 = arith.addf %310, %299 : vector<8x32xf32>
    %312 = arith.negf %311 : vector<8x32xf32>
    %313 = math.exp %312 : vector<8x32xf32>
    %cst_74 = arith.constant 1.000000e+00 : f32
    %314 = vector.broadcast %cst_74 : f32 to vector<8x32xf32>
    %315 = arith.addf %314, %313 : vector<8x32xf32>
    %316 = arith.divf %314, %315 : vector<8x32xf32>
    %317 = vector.extract_strided_slice %296 {offsets = [1, 0, 0], sizes = [1, 8, 32], strides = [1, 1, 1]} : vector<4x8x32xf32> to vector<1x8x32xf32>
    %318 = vector.shape_cast %317 : vector<1x8x32xf32> to vector<8x32xf32>
    %319 = arith.addf %318, %302 : vector<8x32xf32>
    %320 = arith.negf %319 : vector<8x32xf32>
    %321 = math.exp %320 : vector<8x32xf32>
    %cst_75 = arith.constant 1.000000e+00 : f32
    %322 = vector.broadcast %cst_75 : f32 to vector<8x32xf32>
    %323 = arith.addf %322, %321 : vector<8x32xf32>
    %324 = arith.divf %322, %323 : vector<8x32xf32>
    %325 = vector.extract_strided_slice %296 {offsets = [2, 0, 0], sizes = [1, 8, 32], strides = [1, 1, 1]} : vector<4x8x32xf32> to vector<1x8x32xf32>
    %326 = vector.shape_cast %325 : vector<1x8x32xf32> to vector<8x32xf32>
    %327 = arith.addf %326, %305 : vector<8x32xf32>
    %328 = math.tanh %327 : vector<8x32xf32>
    %329 = vector.extract_strided_slice %296 {offsets = [3, 0, 0], sizes = [1, 8, 32], strides = [1, 1, 1]} : vector<4x8x32xf32> to vector<1x8x32xf32>
    %330 = vector.shape_cast %329 : vector<1x8x32xf32> to vector<8x32xf32>
    %331 = arith.addf %330, %308 : vector<8x32xf32>
    %332 = arith.negf %331 : vector<8x32xf32>
    %333 = math.exp %332 : vector<8x32xf32>
    %cst_76 = arith.constant 1.000000e+00 : f32
    %334 = vector.broadcast %cst_76 : f32 to vector<8x32xf32>
    %335 = arith.addf %334, %333 : vector<8x32xf32>
    %336 = arith.divf %334, %335 : vector<8x32xf32>
    %337 = arith.mulf %324, %291 : vector<8x32xf32>
    %338 = arith.mulf %316, %328 : vector<8x32xf32>
    %339 = arith.addf %337, %338 : vector<8x32xf32>
    %340 = math.tanh %339 : vector<8x32xf32>
    %341 = arith.mulf %336, %340 : vector<8x32xf32>
    %c7_i32 = arith.constant 7 : i32
    %342 = arith.index_cast %c7_i32 : i32 to index
    %c0_77 = arith.constant 0 : index
    %c0_78 = arith.constant 0 : index
    %c0_79 = arith.constant 0 : index
    %343 = vector.load %arg1[%342, %c0_77, %c0_78, %c0_79] : memref<8x4x8x32xf32, #tpu.memory_space<vmem>>, vector<1x4x8x32xf32>
    %344 = vector.shape_cast %343 : vector<1x4x8x32xf32> to vector<4x8x32xf32>
    %345 = vector.extract_strided_slice %3 {offsets = [0, 0, 0], sizes = [1, 32, 32], strides = [1, 1, 1]} : vector<4x32x32xf32> to vector<1x32x32xf32>
    %346 = vector.shape_cast %345 : vector<1x32x32xf32> to vector<32x32xf32>
    %cst_80 = arith.constant dense<0.000000e+00> : vector<8x32xf32>
    %347 = tpu.matmul %341, %346, %cst_80 {dimension_numbers = #tpu.dot_dimension_numbers<[1], [0], [0], [1], [0, 0, 1, 1], [], []>} : vector<8x32xf32>, vector<32x32xf32>, vector<8x32xf32> -> vector<8x32xf32>
    %348 = vector.extract_strided_slice %3 {offsets = [1, 0, 0], sizes = [1, 32, 32], strides = [1, 1, 1]} : vector<4x32x32xf32> to vector<1x32x32xf32>
    %349 = vector.shape_cast %348 : vector<1x32x32xf32> to vector<32x32xf32>
    %cst_81 = arith.constant dense<0.000000e+00> : vector<8x32xf32>
    %350 = tpu.matmul %341, %349, %cst_81 {dimension_numbers = #tpu.dot_dimension_numbers<[1], [0], [0], [1], [0, 0, 1, 1], [], []>} : vector<8x32xf32>, vector<32x32xf32>, vector<8x32xf32> -> vector<8x32xf32>
    %351 = vector.extract_strided_slice %3 {offsets = [2, 0, 0], sizes = [1, 32, 32], strides = [1, 1, 1]} : vector<4x32x32xf32> to vector<1x32x32xf32>
    %352 = vector.shape_cast %351 : vector<1x32x32xf32> to vector<32x32xf32>
    %cst_82 = arith.constant dense<0.000000e+00> : vector<8x32xf32>
    %353 = tpu.matmul %341, %352, %cst_82 {dimension_numbers = #tpu.dot_dimension_numbers<[1], [0], [0], [1], [0, 0, 1, 1], [], []>} : vector<8x32xf32>, vector<32x32xf32>, vector<8x32xf32> -> vector<8x32xf32>
    %354 = vector.extract_strided_slice %3 {offsets = [3, 0, 0], sizes = [1, 32, 32], strides = [1, 1, 1]} : vector<4x32x32xf32> to vector<1x32x32xf32>
    %355 = vector.shape_cast %354 : vector<1x32x32xf32> to vector<32x32xf32>
    %cst_83 = arith.constant dense<0.000000e+00> : vector<8x32xf32>
    %356 = tpu.matmul %341, %355, %cst_83 {dimension_numbers = #tpu.dot_dimension_numbers<[1], [0], [0], [1], [0, 0, 1, 1], [], []>} : vector<8x32xf32>, vector<32x32xf32>, vector<8x32xf32> -> vector<8x32xf32>
    %357 = vector.extract_strided_slice %344 {offsets = [0, 0, 0], sizes = [1, 8, 32], strides = [1, 1, 1]} : vector<4x8x32xf32> to vector<1x8x32xf32>
    %358 = vector.shape_cast %357 : vector<1x8x32xf32> to vector<8x32xf32>
    %359 = arith.addf %358, %347 : vector<8x32xf32>
    %360 = arith.negf %359 : vector<8x32xf32>
    %361 = math.exp %360 : vector<8x32xf32>
    %cst_84 = arith.constant 1.000000e+00 : f32
    %362 = vector.broadcast %cst_84 : f32 to vector<8x32xf32>
    %363 = arith.addf %362, %361 : vector<8x32xf32>
    %364 = arith.divf %362, %363 : vector<8x32xf32>
    %365 = vector.extract_strided_slice %344 {offsets = [1, 0, 0], sizes = [1, 8, 32], strides = [1, 1, 1]} : vector<4x8x32xf32> to vector<1x8x32xf32>
    %366 = vector.shape_cast %365 : vector<1x8x32xf32> to vector<8x32xf32>
    %367 = arith.addf %366, %350 : vector<8x32xf32>
    %368 = arith.negf %367 : vector<8x32xf32>
    %369 = math.exp %368 : vector<8x32xf32>
    %cst_85 = arith.constant 1.000000e+00 : f32
    %370 = vector.broadcast %cst_85 : f32 to vector<8x32xf32>
    %371 = arith.addf %370, %369 : vector<8x32xf32>
    %372 = arith.divf %370, %371 : vector<8x32xf32>
    %373 = vector.extract_strided_slice %344 {offsets = [2, 0, 0], sizes = [1, 8, 32], strides = [1, 1, 1]} : vector<4x8x32xf32> to vector<1x8x32xf32>
    %374 = vector.shape_cast %373 : vector<1x8x32xf32> to vector<8x32xf32>
    %375 = arith.addf %374, %353 : vector<8x32xf32>
    %376 = math.tanh %375 : vector<8x32xf32>
    %377 = vector.extract_strided_slice %344 {offsets = [3, 0, 0], sizes = [1, 8, 32], strides = [1, 1, 1]} : vector<4x8x32xf32> to vector<1x8x32xf32>
    %378 = vector.shape_cast %377 : vector<1x8x32xf32> to vector<8x32xf32>
    %379 = arith.addf %378, %356 : vector<8x32xf32>
    %380 = arith.negf %379 : vector<8x32xf32>
    %381 = math.exp %380 : vector<8x32xf32>
    %cst_86 = arith.constant 1.000000e+00 : f32
    %382 = vector.broadcast %cst_86 : f32 to vector<8x32xf32>
    %383 = arith.addf %382, %381 : vector<8x32xf32>
    %384 = arith.divf %382, %383 : vector<8x32xf32>
    %385 = arith.mulf %372, %339 : vector<8x32xf32>
    %386 = arith.mulf %364, %376 : vector<8x32xf32>
    %387 = arith.addf %385, %386 : vector<8x32xf32>
    %388 = math.tanh %387 : vector<8x32xf32>
    %389 = arith.mulf %384, %388 : vector<8x32xf32>
    %c8_i32 = arith.constant 8 : i32
    %c0_87 = arith.constant 0 : index
    %c0_88 = arith.constant 0 : index
    %390 = vector.load %arg6[%c0_87, %c0_88] : memref<8x32xf32, #tpu.memory_space<vmem>>, vector<8x32xf32>
    tpu.vector_store %arg6[%c0_87, %c0_88], %389 {strides = array<i32>} : memref<8x32xf32, #tpu.memory_space<vmem>>, vector<8x32xf32>,
    %c0_89 = arith.constant 0 : index
    %c0_90 = arith.constant 0 : index
    %391 = vector.load %arg7[%c0_89, %c0_90] : memref<8x32xf32, #tpu.memory_space<vmem>>, vector<8x32xf32>
    tpu.vector_store %arg7[%c0_89, %c0_90], %387 {strides = array<i32>} : memref<8x32xf32, #tpu.memory_space<vmem>>, vector<8x32xf32>,
    %c0_i32_91 = arith.constant 0 : i32
    %392 = arith.cmpi eq, %arg0, %c0_i32_91 : i32
    %393 = arith.extui %392 : i1 to i32
    %c0_i32_92 = arith.constant 0 : i32
    %394 = arith.cmpi ne, %393, %c0_i32_92 : i32
    scf.if %394 {
      %c0_93 = arith.constant 0 : index
      %c0_94 = arith.constant 0 : index
      %395 = vector.load %arg3[%c0_93, %c0_94] : memref<32x2xf32, #tpu.memory_space<vmem>>, vector<32x2xf32>
      %cst_95 = arith.constant dense<0.000000e+00> : vector<8x2xf32>
      %396 = tpu.matmul %389, %395, %cst_95 {dimension_numbers = #tpu.dot_dimension_numbers<[1], [0], [0], [1], [0, 0, 1, 1], [], []>} : vector<8x32xf32>, vector<32x2xf32>, vector<8x2xf32> -> vector<8x2xf32>
      %c0_96 = arith.constant 0 : index
      %c0_97 = arith.constant 0 : index
      %397 = vector.load %arg4[%c0_96, %c0_97] : memref<1x2xf32, #tpu.memory_space<vmem>>, vector<1x2xf32>
      %398 = vector.broadcast %397 : vector<1x2xf32> to vector<8x2xf32>
      %399 = arith.addf %396, %398 : vector<8x2xf32>
      %400 = arith.negf %399 : vector<8x2xf32>
      %401 = math.exp %400 : vector<8x2xf32>
      %cst_98 = arith.constant 1.000000e+00 : f32
      %402 = vector.broadcast %cst_98 : f32 to vector<8x2xf32>
      %403 = arith.addf %402, %401 : vector<8x2xf32>
      %404 = arith.divf %402, %403 : vector<8x2xf32>
      %c0_99 = arith.constant 0 : index
      %c0_100 = arith.constant 0 : index
      %405 = vector.load %arg5[%c0_99, %c0_100] : memref<8x2xf32, #tpu.memory_space<vmem>>, vector<8x2xf32>
      tpu.vector_store %arg5[%c0_99, %c0_100], %404 {strides = array<i32>} : memref<8x2xf32, #tpu.memory_space<vmem>>, vector<8x2xf32>,
    } else {
    }
    return
  }
  func.func @transform_0(%arg0: i32) -> (i32, i32, i32, i32) {
    %c0_i32 = arith.constant 0 : i32
    %c0_i32_0 = arith.constant 0 : i32
    %c0_i32_1 = arith.constant 0 : i32
    %c0_i32_2 = arith.constant 0 : i32
    return %arg0, %c0_i32, %c0_i32_0, %c0_i32_1 : i32, i32, i32, i32
  }
  func.func @transform_1(%arg0: i32) -> (i32, i32, i32) {
    %c0_i32 = arith.constant 0 : i32
    %c0_i32_0 = arith.constant 0 : i32
    %c0_i32_1 = arith.constant 0 : i32
    %c0_i32_2 = arith.constant 0 : i32
    return %c0_i32, %c0_i32_0, %c0_i32_1 : i32, i32, i32
  }
  func.func @transform_2(%arg0: i32) -> (i32, i32) {
    %c0_i32 = arith.constant 0 : i32
    %c0_i32_0 = arith.constant 0 : i32
    %c0_i32_1 = arith.constant 0 : i32
    return %c0_i32, %c0_i32_0 : i32, i32
  }
  func.func @transform_3(%arg0: i32) -> (i32, i32) {
    %c0_i32 = arith.constant 0 : i32
    %c0_i32_0 = arith.constant 0 : i32
    %c0_i32_1 = arith.constant 0 : i32
    return %c0_i32, %c0_i32_0 : i32, i32
  }
  func.func @transform_4(%arg0: i32) -> (i32, i32) {
    %c0_i32 = arith.constant 0 : i32
    %c0_i32_0 = arith.constant 0 : i32
    %c0_i32_1 = arith.constant 0 : i32
    return %c0_i32, %c0_i32_0 : i32, i32
  }
}

</mosaic_0001>

<bundles_post_ra>
// kernel: tpu_custom_call.1
= control target key start
LH: loop header
LB: loop body
LE: loop exit
PB: predicated region body
PF: predicated region fallthrough
CT: control target
= control target key end

     0   :  { %9 = vsyncpa [#allocation5], 0  ;;  %s1904_s0 = inlined_call_operand.hbm [shape: f32[8,4,8,32], index: 0, kind: input, shape index: {}]   ;;  %s1905_s1 = inlined_call_operand.hbm [shape: f32[4,32,32], index: 1, kind: input, shape index: {}]   ;;  %s1906_s2 = inlined_call_operand.vmem [shape: f32[32,2], index: 2, kind: input, shape index: {}]   ;;  %s1907_s3 = inlined_call_operand.vmem [shape: f32[1,2], index: 3, kind: input, shape index: {}]   ;;  %s1908_s4 = inlined_call_operand.vmem [shape: f32[8,2], index: 4, kind: output, shape index: {}]  }
   0x1   :  { %s15_s17 = sshll.u32 %s1904_s0, 4  ;;  %s16_s17 = int_to_ptr.hbm [resolvable:$true] %s15_s17 }
   0x2   :  { %10 = vsyncpa [#allocation7], 0  ;;  %s1641_s18 = smov [#allocation4]   ;;  %s28_s22 = sshll.u32 %s1905_s1, 4  ;;  %s29_s22 = int_to_ptr.hbm [resolvable:$true] %s28_s22 }
   0x3   :  { %s17_s19 = sshll.u32 %s1641_s18, 4  ;;  %s1642_s23 = smov 128   ;;  %s18_s19 = int_to_ptr.vmem [resolvable:$true] %s17_s19 }
   0x4   :  { %s1643_s24 = smov 8   ;;  %s1644_s25 = smov [#allocation6]  }
   0x5   :  { %23 = dma.hbm_to_vmem [thread:$0]  %s16_s17, 4096, %s18_s19, [#allocation5], %s1642_s23, %s1642_s23, %s1643_s24  }
   0x6   :  { %s30_s26 = sshll.u32 %s1644_s25, 4  ;;  %s31_s26 = int_to_ptr.vmem [resolvable:$true] %s30_s26 }
   0x7   :  { %36 = dma.hbm_to_vmem [thread:$0]  %s29_s22, 2048, %s31_s26, [#allocation7], %s1642_s23, %s1642_s23, %s1643_s24  }
   0x8   :  { %1637 = dma.done.wait [#allocation5], 4096  }
   0x9   :  { %1638 = vsyncadd [#allocation5], 4294963200 }
   0xa   :  { %1639 = dma.done.wait [#allocation7], 2048  }
   0xb   :  { %1640 = vsyncadd [#allocation7], 4294965248  ;;  %vm53_vm0 = vcmask 261120   ;;  %v1645_v0 = vmov 0.0   ;;  %v1679_v1 = vld [vmem:[#allocation6 + $0x18] sm:$0xff]  ;;  %v1687_v4 = vld [vmem:[#allocation6 + $0x10] sm:$0xff] }
   0xc   :  { %54 = vst.msk [vmem:[#allocation2] sm:$0xff] %vm53_vm0, %v1645_v0  ;;  %v1681_v2 = vld [vmem:[#allocation6 + $0x38] sm:$0xff]  ;;  %94 = vmatpush.msra.mxu0 %v1679_v1  ;;  %v1689_v5 = vld [vmem:[#allocation6 + $0x30] sm:$0xff]  ;;  %v1694_v7 = vld [vmem:[#allocation6 + $0x8] sm:$0xff] }
   0xd   :  { %55 = vst.msk [vmem:[#allocation3] sm:$0xff] %vm53_vm0, %v1645_v0  ;;  %v1683_v3 = vld [vmem:[#allocation6 + $0x78] sm:$0xff]  ;;  %114 = vmatpush.msra.mxu1 %v1681_v2  ;;  %v1691_v6 = vld [vmem:[#allocation6 + $0x70] sm:$0xff]  ;;  %v1696_v8 = vld [vmem:[#allocation6 + $0x28] sm:$0xff] }
   0xe   :  { %154 = vmatpush.msra.mxu3 %v1683_v3  ;;  %95 = vmatpush.msra.mxu0 %v1687_v4  ;;  %v1700_v9 = vld [vmem:[#allocation6 + $0x68] sm:$0xff]  ;;  %v1703_v10 = vld [vmem:[#allocation6] sm:$0xff]  ;;  %v1707_v12 = vld [vmem:[#allocation6 + $0x58] sm:$0xff] }
   0xf   :  { %115 = vmatpush.msra.mxu1 %v1689_v5  ;;  %v1705_v11 = vld [vmem:[#allocation6 + $0x20] sm:$0xff]  ;;  %134 = vmatpush.msra.mxu2 %v1707_v12  ;;  %v1717_v15 = vld [vmem:[#allocation6 + $0x50] sm:$0xff]  ;;  %v1723_v16 = vld [vmem:[#allocation6 + $0x48] sm:$0xff] }
  0x10   :  { %155 = vmatpush.msra.mxu3 %v1691_v6  ;;  %96 = vmatpush.msra.mxu0 %v1694_v7  ;;  %v1711_v13 = vld [vmem:[#allocation6 + $0x60] sm:$0xff]  ;;  %v75_v19 = vld [vmem:[#allocation4 + $0x8] sm:$0xff]  ;;  %v77_v26 = vld [vmem:[#allocation4 + $0x18] sm:$0xff] }
  0x11   :  { %116 = vmatpush.msra.mxu1 %v1696_v8  ;;  %135 = vmatpush.msra.mxu2 %v1717_v15  ;;  %v1727_v17 = vld [vmem:[#allocation6 + $0x40] sm:$0xff]  ;;  %v76_v34 = vld [vmem:[#allocation4 + $0x10] sm:$0xff] }
  0x12   :  { %156 = vmatpush.msra.mxu3 %v1700_v9  ;;  %97 = vmatpush.msra.mxu0 %v1703_v10  ;;  %v74_v18 = vld [vmem:[#allocation4] sm:$0xff] }
  0x13   :  { %v72_v14 = vld [vmem:[#allocation2] sm:$0xff]  ;;  %117 = vmatpush.msra.mxu1 %v1705_v11  ;;  %136 = vmatpush.msra.mxu2 %v1723_v16 }
  0x14   :  { %157 = vmatpush.msra.mxu3 %v1711_v13  ;;  %1377 = vmatmul.msk.f32.vlgmr.msra.gmra.mxu0 %vm53_vm0, %v72_v14  ;;  %v73_v58 = vld [vmem:[#allocation3] sm:$0xff] }
  0x15   :  { %1378 = vmatmul.msk.f32.vlgmr.msra.gmra.mxu1 %vm53_vm0, %v72_v14  ;;  %1380 = vmatmul.msk.f32.vlgmr.msra.gmra.mxu3 %vm53_vm0, %v72_v14 }
  0x16   :  { %249 = vmatpush.msrb.mxu0 %v1679_v1  ;;  %269 = vmatpush.msrb.mxu1 %v1681_v2 }
  0x17   :  { %309 = vmatpush.msrb.mxu3 %v1683_v3  ;;  %137 = vmatpush.msra.mxu2 %v1727_v17 }
  0x18   :  { %250 = vmatpush.msrb.mxu0 %v1687_v4  ;;  %270 = vmatpush.msrb.mxu1 %v1689_v5 }
  0x19   :  { %310 = vmatpush.msrb.mxu3 %v1691_v6  ;;  %1379 = vmatmul.msk.f32.vlgmr.msra.gmra.mxu2 %vm53_vm0, %v72_v14 }
  0x1a   :  { %251 = vmatpush.msrb.mxu0 %v1694_v7  ;;  %271 = vmatpush.msrb.mxu1 %v1696_v8 }
  0x1b   :  { %289 = vmatpush.msrb.mxu2 %v1707_v12  ;;  %311 = vmatpush.msrb.mxu3 %v1700_v9 }
  0x1c   :  { %252 = vmatpush.msrb.mxu0 %v1703_v10  ;;  %272 = vmatpush.msrb.mxu1 %v1705_v11 }
  0x1d   :  { %290 = vmatpush.msrb.mxu2 %v1717_v15  ;;  %312 = vmatpush.msrb.mxu3 %v1711_v13 }
  0x1e   :  { %404 = vmatpush.msra.mxu0 %v1679_v1  ;;  %424 = vmatpush.msra.mxu1 %v1681_v2 }
  0x1f   :  { %291 = vmatpush.msrb.mxu2 %v1723_v16  ;;  %464 = vmatpush.msra.mxu3 %v1683_v3 }
  0x20   :  { %405 = vmatpush.msra.mxu0 %v1687_v4  ;;  %425 = vmatpush.msra.mxu1 %v1689_v5 }
  0x21   :  { %292 = vmatpush.msrb.mxu2 %v1727_v17  ;;  %465 = vmatpush.msra.mxu3 %v1691_v6 }
  0x22   :  { %406 = vmatpush.msra.mxu0 %v1694_v7  ;;  %426 = vmatpush.msra.mxu1 %v1696_v8 }
  0x23   :  { %444 = vmatpush.msra.mxu2 %v1707_v12  ;;  %466 = vmatpush.msra.mxu3 %v1700_v9 }
  0x24   :  { %407 = vmatpush.msra.mxu0 %v1703_v10  ;;  %427 = vmatpush.msra.mxu1 %v1705_v11 }
  0x25   :  { %445 = vmatpush.msra.mxu2 %v1717_v15  ;;  %467 = vmatpush.msra.mxu3 %v1711_v13 }
  0x27   :  { %446 = vmatpush.msra.mxu2 %v1723_v16 }
  0x29   :  { %447 = vmatpush.msra.mxu2 %v1727_v17 }
  0x91   :  { %v99_v20 = vpop.f32.mrf.mxu0 }
  0x92   :  { %v162_v21 = vadd.f32 %v99_v20, %v74_v18  ;;  %v119_v22 = vpop.f32.mrf.mxu1 }
  0x93   :  { %v182_v23 = vadd.f32 %v119_v22, %v75_v19 }
  0x94   :  { %v1381_v24 = vmul.f32 -1.442695, %v162_v21 }
  0x95   :  { %v1382_v25 = vmul.f32 -1.442695, %v182_v23 }
  0x96   :  { %1441 = vpow2.f32 %v1381_v24 }
  0x97   :  { %1443 = vpow2.f32 %v1382_v25 }
  0x98   :  { %v159_v27 = vpop.f32.mrf.mxu3 }
  0x99   :  { %v204_v28 = vadd.f32 %v159_v27, %v77_v26 }
  0x9b   :  { %v1383_v29 = vmul.f32 -1.442695, %v204_v28  ;;  %v230_v28 = vld [vmem:[#allocation4 + $0x20] sm:$0xff] }
  0x9c   :  { %v1442_v30 = vpop.eup %1441  ;;  %v139_v35 = vpop.f32.mrf.mxu2 }
  0x9d   :  { %v1444_v31 = vpop.eup %1443  ;;  %v166_v32 = vadd.f32 1.0, %v1442_v30  ;;  %1445 = vpow2.f32 %v1383_v29  ;;  %v202_v37 = vadd.f32 %v139_v35, %v76_v34  ;;  %v231_v29 = vld [vmem:[#allocation4 + $0x28] sm:$0xff] }
  0x9e   :  { %v186_v33 = vadd.f32 1.0, %v1444_v31 }
  0x9f   :  { %1447 = vrcp.f32 %v166_v32  ;;  %v178_v45 = vand.u32 2147483648, %v166_v32  ;;  %v176_v48 = vand.u32 2147483647, %v166_v32  ;;  %vm172_vm3 = vweird.f32 %v166_v32 }
  0xa0   :  { %1449 = vrcp.f32 %v186_v33  ;;  %v198_v46 = vand.u32 2147483648, %v186_v33  ;;  %v196_v50 = vand.u32 2147483647, %v186_v33  ;;  %vm192_vm4 = vweird.f32 %v186_v33 }
  0xa1   :  { %v179_v55 = vor.u32 1.1754944e-38, %v178_v45  ;;  %vm177_vm7 = vcmp.eq.f32.partialorder %v176_v48, 8.507059e+37 }
  0xa2   :  { %v199_v57 = vor.u32 1.1754944e-38, %v198_v46  ;;  %vm197_vm8 = vcmp.eq.f32.partialorder %v196_v50, 8.507059e+37 }
  0xa3   :  { %v1446_v36 = vpop.eup %1445 }
  0xa4   :  { %v208_v38 = vadd.f32 1.0, %v1446_v36  ;;  %v233_v36 = vld [vmem:[#allocation4 + $0x38] sm:$0xff] }
  0xa5   :  { %v1448_v39 = vpop.eup %1447 }
  0xa6   :  { %v1450_v40 = vpop.eup %1449  ;;  %v168_v41 = vmul.f32 %v1448_v39, %v166_v32  ;;  %1451 = vrcp.f32 %v208_v38  ;;  %vm173_vm1 = vweird.f32 %v1448_v39  ;;  %v220_v21 = vand.u32 2147483648, %v208_v38 }
  0xa7   :  { %v188_v42 = vmul.f32 %v1450_v40, %v186_v33  ;;  %1453 = vtanh.f32 %v202_v37  ;;  %vm193_vm2 = vweird.f32 %v1450_v40  ;;  %vm174_vm5 = vmor %vm172_vm3, %vm173_vm1  ;;  %vm214_vm10 = vweird.f32 %v208_v38 }
  0xa8   :  { %v169_v43 = vsub.f32 1.0, %v168_v41  ;;  %vm194_vm6 = vmor %vm192_vm4, %vm193_vm2  ;;  %v218_v22 = vand.u32 2147483647, %v208_v38  ;;  %v221_v24 = vor.u32 1.1754944e-38, %v220_v21 }
  0xa9   :  { %v189_v44 = vsub.f32 1.0, %v188_v42 }
  0xaa   :  { %v170_v47 = vmul.f32 %v1448_v39, %v169_v43  ;;  %vm219_vm12 = vcmp.eq.f32.partialorder %v218_v22, 8.507059e+37 }
  0xab   :  { %v190_v49 = vmul.f32 %v1450_v40, %v189_v44  ;;  %v232_v44 = vld [vmem:[#allocation4 + $0x30] sm:$0xff] }
  0xac   :  { %v1452_v51 = vpop.eup %1451  ;;  %v171_v52 = vadd.f32 %v1448_v39, %v170_v47 }
  0xad   :  { %v1454_v53 = vpop.eup %1453  ;;  %v210_v54 = vmul.f32 %v1452_v51, %v208_v38  ;;  %v191_v56 = vadd.f32 %v1450_v40, %v190_v49  ;;  %vm215_vm9 = vweird.f32 %v1452_v51 }
  0xae   :  { %v175_v59 = vsel %vm174_vm5, %v1448_v39, %v171_v52  ;;  %vm216_vm11 = vmor %vm214_vm10, %vm215_vm9 }
  0xaf   :  { %v211_v60 = vsub.f32 1.0, %v210_v54  ;;  %v180_v61 = vsel %vm177_vm7, %v179_v55, %v175_v59  ;;  %v195_v62 = vsel %vm194_vm6, %v1450_v40, %v191_v56 }
  0xb0   :  { %v200_v63 = vsel %vm197_vm8, %v199_v57, %v195_v62  ;;  %v225_v0 = vmul.f32 %v1454_v53, %v180_v61 }
  0xb1   :  { %v224_v14 = vmul.f32 %v200_v63, %v73_v58  ;;  %v212_v18 = vmul.f32 %v1452_v51, %v211_v60 }
  0xb3   :  { %v1763_v19 = vadd.f32 %v225_v0, %v224_v14  ;;  %v213_v20 = vadd.f32 %v1452_v51, %v212_v18 }
  0xb5   :  { %1455 = vtanh.f32 %v1763_v19  ;;  %v217_v23 = vsel %vm216_vm11, %v1452_v51, %v213_v20 }
  0xb6   :  { %v222_v26 = vsel %vm219_vm12, %v221_v24, %v217_v23 }
  0xbb   :  { %v1456_v25 = vpop.eup %1455 }
  0xbc   :  { %v228_v27 = vmul.f32 %v1456_v25, %v222_v26 }
  0xbe   :  { %1384 = vmatmul.msk.f32.vlgmr.msrb.gmra.mxu0 %vm53_vm0, %v228_v27  ;;  %1385 = vmatmul.msk.f32.vlgmr.msrb.gmra.mxu1 %vm53_vm0, %v228_v27 }
  0xbf   :  { %1386 = vmatmul.msk.f32.vlgmr.msrb.gmra.mxu2 %vm53_vm0, %v228_v27  ;;  %1387 = vmatmul.msk.f32.vlgmr.msrb.gmra.mxu3 %vm53_vm0, %v228_v27 }
  0xc0   :  { %559 = vmatpush.msrb.mxu0 %v1679_v1  ;;  %579 = vmatpush.msrb.mxu1 %v1681_v2 }
  0xc1   :  { %599 = vmatpush.msrb.mxu2 %v1707_v12  ;;  %619 = vmatpush.msrb.mxu3 %v1683_v3 }
  0xc2   :  { %560 = vmatpush.msrb.mxu0 %v1687_v4  ;;  %580 = vmatpush.msrb.mxu1 %v1689_v5 }
  0xc3   :  { %600 = vmatpush.msrb.mxu2 %v1717_v15  ;;  %620 = vmatpush.msrb.mxu3 %v1691_v6 }
  0xc4   :  { %561 = vmatpush.msrb.mxu0 %v1694_v7  ;;  %581 = vmatpush.msrb.mxu1 %v1696_v8 }
  0xc5   :  { %601 = vmatpush.msrb.mxu2 %v1723_v16  ;;  %621 = vmatpush.msrb.mxu3 %v1700_v9 }
  0xc6   :  { %562 = vmatpush.msrb.mxu0 %v1703_v10  ;;  %582 = vmatpush.msrb.mxu1 %v1705_v11 }
  0xc7   :  { %602 = vmatpush.msrb.mxu2 %v1727_v17  ;;  %622 = vmatpush.msrb.mxu3 %v1711_v13 }
 0x13b   :  { %v254_v30 = vpop.f32.mrf.mxu0  ;;  %v274_v31 = vpop.f32.mrf.mxu1 }
 0x13c   :  { %v317_v32 = vadd.f32 %v254_v30, %v230_v28  ;;  %v337_v33 = vadd.f32 %v274_v31, %v231_v29 }
 0x13e   :  { %v1388_v34 = vmul.f32 -1.442695, %v317_v32  ;;  %v1389_v35 = vmul.f32 -1.442695, %v337_v33 }
 0x140   :  { %1457 = vpow2.f32 %v1388_v34 }
 0x141   :  { %1459 = vpow2.f32 %v1389_v35 }
 0x142   :  { %v314_v37 = vpop.f32.mrf.mxu3  ;;  %v294_v45 = vpop.f32.mrf.mxu2 }
 0x143   :  { %v359_v38 = vadd.f32 %v314_v37, %v233_v36  ;;  %v357_v49 = vadd.f32 %v294_v45, %v232_v44  ;;  %v388_v45 = vld [vmem:[#allocation4 + $0x58] sm:$0xff] }
 0x145   :  { %v1390_v39 = vmul.f32 -1.442695, %v359_v38  ;;  %v386_v38 = vld [vmem:[#allocation4 + $0x48] sm:$0xff] }
 0x146   :  { %v1458_v40 = vpop.eup %1457 }
 0x147   :  { %v1460_v41 = vpop.eup %1459  ;;  %v321_v42 = vadd.f32 1.0, %v1458_v40  ;;  %1461 = vpow2.f32 %v1390_v39 }
 0x148   :  { %v341_v43 = vadd.f32 1.0, %v1460_v41 }
 0x149   :  { %1463 = vrcp.f32 %v321_v42  ;;  %v333_v55 = vand.u32 2147483648, %v321_v42  ;;  %v331_v58 = vand.u32 2147483647, %v321_v42  ;;  %vm327_vm15 = vweird.f32 %v321_v42 }
 0x14a   :  { %1465 = vrcp.f32 %v341_v43  ;;  %v353_v56 = vand.u32 2147483648, %v341_v43  ;;  %v351_v60 = vand.u32 2147483647, %v341_v43  ;;  %vm347_vm1 = vweird.f32 %v341_v43 }
 0x14b   :  { %v334_v63 = vor.u32 1.1754944e-38, %v333_v55  ;;  %vm332_vm4 = vcmp.eq.f32.partialorder %v331_v58, 8.507059e+37 }
 0x14c   :  { %v354_v18 = vor.u32 1.1754944e-38, %v353_v56  ;;  %vm352_vm5 = vcmp.eq.f32.partialorder %v351_v60, 8.507059e+37 }
 0x14d   :  { %v1462_v46 = vpop.eup %1461 }
 0x14e   :  { %v363_v47 = vadd.f32 1.0, %v1462_v46 }
 0x14f   :  { %v1464_v48 = vpop.eup %1463 }
 0x150   :  { %v1466_v50 = vpop.eup %1465  ;;  %v323_v51 = vmul.f32 %v1464_v48, %v321_v42  ;;  %1467 = vrcp.f32 %v363_v47  ;;  %vm328_vm13 = vweird.f32 %v1464_v48  ;;  %v375_v31 = vand.u32 2147483648, %v363_v47 }
 0x151   :  { %v343_v52 = vmul.f32 %v1466_v50, %v341_v43  ;;  %1469 = vtanh.f32 %v357_v49  ;;  %vm348_vm14 = vweird.f32 %v1466_v50  ;;  %vm329_vm2 = vmor %vm327_vm15, %vm328_vm13  ;;  %vm369_vm7 = vweird.f32 %v363_v47 }
 0x152   :  { %v324_v53 = vsub.f32 1.0, %v323_v51  ;;  %vm349_vm3 = vmor %vm347_vm1, %vm348_vm14  ;;  %v373_v32 = vand.u32 2147483647, %v363_v47  ;;  %v376_v34 = vor.u32 1.1754944e-38, %v375_v31 }
 0x153   :  { %v344_v54 = vsub.f32 1.0, %v343_v52 }
 0x154   :  { %v325_v57 = vmul.f32 %v1464_v48, %v324_v53  ;;  %vm374_vm9 = vcmp.eq.f32.partialorder %v373_v32, 8.507059e+37  ;;  %v387_v53 = vld [vmem:[#allocation4 + $0x50] sm:$0xff] }
 0x155   :  { %v345_v59 = vmul.f32 %v1466_v50, %v344_v54 }
 0x156   :  { %v1468_v61 = vpop.eup %1467  ;;  %v326_v62 = vadd.f32 %v1464_v48, %v325_v57 }
 0x157   :  { %v346_v0 = vadd.f32 %v1466_v50, %v345_v59  ;;  %v365_v14 = vmul.f32 %v1468_v61, %v363_v47  ;;  %v1470_v21 = vpop.eup %1469  ;;  %vm370_vm6 = vweird.f32 %v1468_v61 }
 0x158   :  { %v330_v20 = vsel %vm329_vm2, %v1464_v48, %v326_v62  ;;  %vm371_vm8 = vmor %vm369_vm7, %vm370_vm6 }
 0x159   :  { %v335_v22 = vsel %vm332_vm4, %v334_v63, %v330_v20  ;;  %v350_v23 = vsel %vm349_vm3, %v1466_v50, %v346_v0  ;;  %v366_v24 = vsub.f32 1.0, %v365_v14 }
 0x15a   :  { %v355_v25 = vsel %vm352_vm5, %v354_v18, %v350_v23  ;;  %v380_v26 = vmul.f32 %v1470_v21, %v335_v22 }
 0x15b   :  { %v379_v27 = vmul.f32 %v355_v25, %v1763_v19  ;;  %v367_v28 = vmul.f32 %v1468_v61, %v366_v24  ;;  %v385_v19 = vld [vmem:[#allocation4 + $0x40] sm:$0xff] }
 0x15d   :  { %v1787_v29 = vadd.f32 %v380_v26, %v379_v27  ;;  %v368_v30 = vadd.f32 %v1468_v61, %v367_v28 }
 0x15f   :  { %1471 = vtanh.f32 %v1787_v29  ;;  %v372_v33 = vsel %vm371_vm8, %v1468_v61, %v368_v30 }
 0x160   :  { %v377_v36 = vsel %vm374_vm9, %v376_v34, %v372_v33 }
 0x165   :  { %v1472_v35 = vpop.eup %1471 }
 0x166   :  { %v383_v37 = vmul.f32 %v1472_v35, %v377_v36 }
 0x168   :  { %1391 = vmatmul.msk.f32.vlgmr.msra.gmra.mxu0 %vm53_vm0, %v383_v37  ;;  %1392 = vmatmul.msk.f32.vlgmr.msra.gmra.mxu1 %vm53_vm0, %v383_v37 }
 0x169   :  { %1393 = vmatmul.msk.f32.vlgmr.msra.gmra.mxu2 %vm53_vm0, %v383_v37  ;;  %1394 = vmatmul.msk.f32.vlgmr.msra.gmra.mxu3 %vm53_vm0, %v383_v37 }
 0x16a   :  { %714 = vmatpush.msra.mxu0 %v1679_v1  ;;  %734 = vmatpush.msra.mxu1 %v1681_v2 }
 0x16b   :  { %754 = vmatpush.msra.mxu2 %v1707_v12  ;;  %774 = vmatpush.msra.mxu3 %v1683_v3 }
 0x16c   :  { %715 = vmatpush.msra.mxu0 %v1687_v4  ;;  %735 = vmatpush.msra.mxu1 %v1689_v5 }
 0x16d   :  { %755 = vmatpush.msra.mxu2 %v1717_v15  ;;  %775 = vmatpush.msra.mxu3 %v1691_v6 }
 0x16e   :  { %716 = vmatpush.msra.mxu0 %v1694_v7  ;;  %736 = vmatpush.msra.mxu1 %v1696_v8 }
 0x16f   :  { %756 = vmatpush.msra.mxu2 %v1723_v16  ;;  %776 = vmatpush.msra.mxu3 %v1700_v9 }
 0x170   :  { %717 = vmatpush.msra.mxu0 %v1703_v10  ;;  %737 = vmatpush.msra.mxu1 %v1705_v11 }
 0x171   :  { %757 = vmatpush.msra.mxu2 %v1727_v17  ;;  %777 = vmatpush.msra.mxu3 %v1711_v13 }
 0x1e5   :  { %v409_v39 = vpop.f32.mrf.mxu0  ;;  %v429_v40 = vpop.f32.mrf.mxu1 }
 0x1e6   :  { %v472_v41 = vadd.f32 %v409_v39, %v385_v19  ;;  %v492_v42 = vadd.f32 %v429_v40, %v386_v38 }
 0x1e8   :  { %v1395_v43 = vmul.f32 -1.442695, %v472_v41  ;;  %v1396_v44 = vmul.f32 -1.442695, %v492_v42 }
 0x1ea   :  { %1473 = vpow2.f32 %v1395_v43 }
 0x1eb   :  { %1475 = vpow2.f32 %v1396_v44 }
 0x1ec   :  { %v469_v46 = vpop.f32.mrf.mxu3  ;;  %v449_v54 = vpop.f32.mrf.mxu2 }
 0x1ed   :  { %v514_v47 = vadd.f32 %v469_v46, %v388_v45  ;;  %v512_v58 = vadd.f32 %v449_v54, %v387_v53  ;;  %v543_v54 = vld [vmem:[#allocation4 + $0x78] sm:$0xff] }
 0x1ef   :  { %v1397_v48 = vmul.f32 -1.442695, %v514_v47  ;;  %v541_v47 = vld [vmem:[#allocation4 + $0x68] sm:$0xff] }
 0x1f0   :  { %v1474_v49 = vpop.eup %1473 }
 0x1f1   :  { %v1476_v50 = vpop.eup %1475  ;;  %v476_v51 = vadd.f32 1.0, %v1474_v49  ;;  %1477 = vpow2.f32 %v1397_v48 }
 0x1f2   :  { %v496_v52 = vadd.f32 1.0, %v1476_v50 }
 0x1f3   :  { %1479 = vrcp.f32 %v476_v51  ;;  %v488_v0 = vand.u32 2147483648, %v476_v51  ;;  %v486_v20 = vand.u32 2147483647, %v476_v51  ;;  %vm482_vm12 = vweird.f32 %v476_v51 }
 0x1f4   :  { %1481 = vrcp.f32 %v496_v52  ;;  %v508_v14 = vand.u32 2147483648, %v496_v52  ;;  %v506_v22 = vand.u32 2147483647, %v496_v52  ;;  %vm502_vm13 = vweird.f32 %v496_v52 }
 0x1f5   :  { %v489_v25 = vor.u32 1.1754944e-38, %v488_v0  ;;  %vm487_vm1 = vcmp.eq.f32.partialorder %v486_v20, 8.507059e+37 }
 0x1f6   :  { %v509_v28 = vor.u32 1.1754944e-38, %v508_v14  ;;  %vm507_vm2 = vcmp.eq.f32.partialorder %v506_v22, 8.507059e+37 }
 0x1f7   :  { %v1478_v55 = vpop.eup %1477 }
 0x1f8   :  { %v518_v56 = vadd.f32 1.0, %v1478_v55 }
 0x1f9   :  { %v1480_v57 = vpop.eup %1479 }
 0x1fa   :  { %v1482_v59 = vpop.eup %1481  ;;  %v478_v60 = vmul.f32 %v1480_v57, %v476_v51  ;;  %1483 = vrcp.f32 %v518_v56  ;;  %vm483_vm10 = vweird.f32 %v1480_v57  ;;  %v530_v40 = vand.u32 2147483648, %v518_v56 }
 0x1fb   :  { %v498_v61 = vmul.f32 %v1482_v59, %v496_v52  ;;  %1485 = vtanh.f32 %v512_v58  ;;  %vm503_vm11 = vweird.f32 %v1482_v59  ;;  %vm484_vm14 = vmor %vm482_vm12, %vm483_vm10  ;;  %vm524_vm4 = vweird.f32 %v518_v56 }
 0x1fc   :  { %v479_v62 = vsub.f32 1.0, %v478_v60  ;;  %vm504_vm15 = vmor %vm502_vm13, %vm503_vm11  ;;  %v528_v41 = vand.u32 2147483647, %v518_v56  ;;  %v531_v43 = vor.u32 1.1754944e-38, %v530_v40 }
 0x1fd   :  { %v499_v63 = vsub.f32 1.0, %v498_v61 }
 0x1fe   :  { %v480_v18 = vmul.f32 %v1480_v57, %v479_v62  ;;  %vm529_vm6 = vcmp.eq.f32.partialorder %v528_v41, 8.507059e+37  ;;  %v542_v62 = vld [vmem:[#allocation4 + $0x70] sm:$0xff] }
 0x1ff   :  { %v500_v21 = vmul.f32 %v1482_v59, %v499_v63 }
 0x200   :  { %v1484_v23 = vpop.eup %1483  ;;  %v481_v24 = vadd.f32 %v1480_v57, %v480_v18 }
 0x201   :  { %v501_v26 = vadd.f32 %v1482_v59, %v500_v21  ;;  %v520_v27 = vmul.f32 %v1484_v23, %v518_v56  ;;  %v1486_v31 = vpop.eup %1485  ;;  %vm525_vm3 = vweird.f32 %v1484_v23 }
 0x202   :  { %v485_v30 = vsel %vm484_vm14, %v1480_v57, %v481_v24  ;;  %vm526_vm5 = vmor %vm524_vm4, %vm525_vm3 }
 0x203   :  { %v490_v32 = vsel %vm487_vm1, %v489_v25, %v485_v30  ;;  %v505_v33 = vsel %vm504_vm15, %v1482_v59, %v501_v26  ;;  %v521_v34 = vsub.f32 1.0, %v520_v27 }
 0x204   :  { %v510_v35 = vsel %vm507_vm2, %v509_v28, %v505_v33  ;;  %v535_v36 = vmul.f32 %v1486_v31, %v490_v32 }
 0x205   :  { %v534_v37 = vmul.f32 %v510_v35, %v1787_v29  ;;  %v522_v19 = vmul.f32 %v1484_v23, %v521_v34  ;;  %v540_v29 = vld [vmem:[#allocation4 + $0x60] sm:$0xff] }
 0x207   :  { %v1811_v38 = vadd.f32 %v535_v36, %v534_v37  ;;  %v523_v39 = vadd.f32 %v1484_v23, %v522_v19 }
 0x209   :  { %1487 = vtanh.f32 %v1811_v38  ;;  %v527_v42 = vsel %vm526_vm5, %v1484_v23, %v523_v39 }
 0x20a   :  { %v532_v45 = vsel %vm529_vm6, %v531_v43, %v527_v42 }
 0x20f   :  { %v1488_v44 = vpop.eup %1487 }
 0x210   :  { %v538_v46 = vmul.f32 %v1488_v44, %v532_v45 }
 0x212   :  { %1398 = vmatmul.msk.f32.vlgmr.msrb.gmra.mxu0 %vm53_vm0, %v538_v46  ;;  %1399 = vmatmul.msk.f32.vlgmr.msrb.gmra.mxu1 %vm53_vm0, %v538_v46 }
 0x213   :  { %1400 = vmatmul.msk.f32.vlgmr.msrb.gmra.mxu2 %vm53_vm0, %v538_v46  ;;  %1401 = vmatmul.msk.f32.vlgmr.msrb.gmra.mxu3 %vm53_vm0, %v538_v46 }
 0x214   :  { %869 = vmatpush.msrb.mxu0 %v1679_v1  ;;  %889 = vmatpush.msrb.mxu1 %v1681_v2 }
 0x215   :  { %909 = vmatpush.msrb.mxu2 %v1707_v12  ;;  %929 = vmatpush.msrb.mxu3 %v1683_v3 }
 0x216   :  { %870 = vmatpush.msrb.mxu0 %v1687_v4  ;;  %890 = vmatpush.msrb.mxu1 %v1689_v5 }
 0x217   :  { %910 = vmatpush.msrb.mxu2 %v1717_v15  ;;  %930 = vmatpush.msrb.mxu3 %v1691_v6 }
 0x218   :  { %871 = vmatpush.msrb.mxu0 %v1694_v7  ;;  %891 = vmatpush.msrb.mxu1 %v1696_v8 }
 0x219   :  { %911 = vmatpush.msrb.mxu2 %v1723_v16  ;;  %931 = vmatpush.msrb.mxu3 %v1700_v9 }
 0x21a   :  { %872 = vmatpush.msrb.mxu0 %v1703_v10  ;;  %892 = vmatpush.msrb.mxu1 %v1705_v11 }
 0x21b   :  { %912 = vmatpush.msrb.mxu2 %v1727_v17  ;;  %932 = vmatpush.msrb.mxu3 %v1711_v13 }
 0x28f   :  { %v564_v48 = vpop.f32.mrf.mxu0  ;;  %v584_v49 = vpop.f32.mrf.mxu1 }
 0x290   :  { %v627_v50 = vadd.f32 %v564_v48, %v540_v29  ;;  %v647_v51 = vadd.f32 %v584_v49, %v541_v47 }
 0x292   :  { %v1402_v52 = vmul.f32 -1.442695, %v627_v50  ;;  %v1403_v53 = vmul.f32 -1.442695, %v647_v51 }
 0x294   :  { %1489 = vpow2.f32 %v1402_v52 }
 0x295   :  { %1491 = vpow2.f32 %v1403_v53 }
 0x296   :  { %v624_v55 = vpop.f32.mrf.mxu3  ;;  %v604_v63 = vpop.f32.mrf.mxu2 }
 0x297   :  { %v669_v56 = vadd.f32 %v624_v55, %v543_v54  ;;  %v667_v20 = vadd.f32 %v604_v63, %v542_v62 }
 0x299   :  { %v1404_v57 = vmul.f32 -1.442695, %v669_v56 }
 0x29a   :  { %v1490_v58 = vpop.eup %1489 }
 0x29b   :  { %v1492_v59 = vpop.eup %1491  ;;  %v631_v60 = vadd.f32 1.0, %v1490_v58  ;;  %1493 = vpow2.f32 %v1404_v57 }
 0x29c   :  { %v651_v61 = vadd.f32 1.0, %v1492_v59 }
 0x29d   :  { %1495 = vrcp.f32 %v631_v60  ;;  %v643_v26 = vand.u32 2147483648, %v631_v60  ;;  %v641_v30 = vand.u32 2147483647, %v631_v60  ;;  %vm637_vm9 = vweird.f32 %v631_v60 }
 0x29e   :  { %1497 = vrcp.f32 %v651_v61  ;;  %v663_v27 = vand.u32 2147483648, %v651_v61  ;;  %v661_v32 = vand.u32 2147483647, %v651_v61  ;;  %vm657_vm10 = vweird.f32 %v651_v61 }
 0x29f   :  { %v644_v35 = vor.u32 1.1754944e-38, %v643_v26  ;;  %vm642_vm13 = vcmp.eq.f32.partialorder %v641_v30, 8.507059e+37 }
 0x2a0   :  { %v664_v19 = vor.u32 1.1754944e-38, %v663_v27  ;;  %vm662_vm14 = vcmp.eq.f32.partialorder %v661_v32, 8.507059e+37 }
 0x2a1   :  { %v1494_v0 = vpop.eup %1493 }
 0x2a2   :  { %v673_v14 = vadd.f32 1.0, %v1494_v0 }
 0x2a3   :  { %v1496_v18 = vpop.eup %1495 }
 0x2a4   :  { %v1498_v21 = vpop.eup %1497  ;;  %v633_v22 = vmul.f32 %v1496_v18, %v631_v60  ;;  %1499 = vrcp.f32 %v673_v14  ;;  %vm638_vm7 = vweird.f32 %v1496_v18  ;;  %v685_v49 = vand.u32 2147483648, %v673_v14 }
 0x2a5   :  { %v653_v23 = vmul.f32 %v1498_v21, %v651_v61  ;;  %1501 = vtanh.f32 %v667_v20  ;;  %vm658_vm8 = vweird.f32 %v1498_v21  ;;  %vm639_vm11 = vmor %vm637_vm9, %vm638_vm7  ;;  %vm679_vm1 = vweird.f32 %v673_v14 }
 0x2a6   :  { %v634_v24 = vsub.f32 1.0, %v633_v22  ;;  %vm659_vm12 = vmor %vm657_vm10, %vm658_vm8  ;;  %v683_v50 = vand.u32 2147483647, %v673_v14  ;;  %v686_v52 = vor.u32 1.1754944e-38, %v685_v49 }
 0x2a7   :  { %v654_v25 = vsub.f32 1.0, %v653_v23 }
 0x2a8   :  { %v635_v28 = vmul.f32 %v1496_v18, %v634_v24  ;;  %vm684_vm3 = vcmp.eq.f32.partialorder %v683_v50, 8.507059e+37  ;;  %v1574_v50 = vld [vmem:[#allocation6 + $0x38] sm:$0xff] }
 0x2a9   :  { %v655_v31 = vmul.f32 %v1498_v21, %v654_v25 }
 0x2aa   :  { %v1500_v33 = vpop.eup %1499  ;;  %v636_v34 = vadd.f32 %v1496_v18, %v635_v28 }
 0x2ab   :  { %v656_v36 = vadd.f32 %v1498_v21, %v655_v31  ;;  %v675_v37 = vmul.f32 %v1500_v33, %v673_v14  ;;  %v1502_v40 = vpop.eup %1501  ;;  %vm680_vm15 = vweird.f32 %v1500_v33 }
 0x2ac   :  { %v640_v39 = vsel %vm639_vm11, %v1496_v18, %v636_v34  ;;  %vm681_vm2 = vmor %vm679_vm1, %vm680_vm15 }
 0x2ad   :  { %v645_v41 = vsel %vm642_vm13, %v644_v35, %v640_v39  ;;  %v660_v42 = vsel %vm659_vm12, %v1498_v21, %v656_v36  ;;  %v676_v43 = vsub.f32 1.0, %v675_v37 }
 0x2ae   :  { %v665_v44 = vsel %vm662_vm14, %v664_v19, %v660_v42  ;;  %v690_v45 = vmul.f32 %v1502_v40, %v645_v41 }
 0x2af   :  { %v689_v46 = vmul.f32 %v665_v44, %v1811_v38  ;;  %v677_v29 = vmul.f32 %v1500_v33, %v676_v43 }
 0x2b1   :  { %v1835_v47 = vadd.f32 %v690_v45, %v689_v46  ;;  %v678_v48 = vadd.f32 %v1500_v33, %v677_v29 }
 0x2b3   :  { %1503 = vtanh.f32 %v1835_v47  ;;  %v682_v51 = vsel %vm681_vm2, %v1500_v33, %v678_v48 }
 0x2b4   :  { %v687_v54 = vsel %vm684_vm3, %v686_v52, %v682_v51  ;;  %v1575_v51 = vld [vmem:[#allocation6 + $0x58] sm:$0xff] }
 0x2b5   :  { %v1576_v52 = vld [vmem:[#allocation6 + $0x78] sm:$0xff] }
 0x2b9   :  { %v1504_v53 = vpop.eup %1503 }
 0x2ba   :  { %v693_v55 = vmul.f32 %v1504_v53, %v687_v54  ;;  %v1577_v53 = vld [vmem:[#allocation6 + $0x10] sm:$0xff] }
 0x2bb   :  { %v1578_v54 = vld [vmem:[#allocation6 + $0x30] sm:$0xff] }
 0x2bc   :  { %1405 = vmatmul.msk.f32.vlgmr.msra.gmra.mxu0 %vm53_vm0, %v693_v55  ;;  %1406 = vmatmul.msk.f32.vlgmr.msra.gmra.mxu1 %vm53_vm0, %v693_v55 }
 0x2bd   :  { %1407 = vmatmul.msk.f32.vlgmr.msra.gmra.mxu2 %vm53_vm0, %v693_v55  ;;  %1408 = vmatmul.msk.f32.vlgmr.msra.gmra.mxu3 %vm53_vm0, %v693_v55  ;;  %v1579_v55 = vld [vmem:[#allocation6 + $0x50] sm:$0xff] }
 0x2be   :  { %1024 = vmatpush.msra.mxu0 %v1679_v1  ;;  %1044 = vmatpush.msra.mxu1 %v1681_v2  ;;  %v695_v1 = vld [vmem:[#allocation4 + $0x80] sm:$0xff]  ;;  %v696_v2 = vld [vmem:[#allocation4 + $0x88] sm:$0xff] }
 0x2bf   :  { %1064 = vmatpush.msra.mxu2 %v1707_v12  ;;  %1084 = vmatpush.msra.mxu3 %v1683_v3  ;;  %v698_v12 = vld [vmem:[#allocation4 + $0x98] sm:$0xff] }
 0x2c0   :  { %1025 = vmatpush.msra.mxu0 %v1687_v4  ;;  %1045 = vmatpush.msra.mxu1 %v1689_v5 }
 0x2c1   :  { %1065 = vmatpush.msra.mxu2 %v1717_v15  ;;  %1085 = vmatpush.msra.mxu3 %v1691_v6 }
 0x2c2   :  { %1026 = vmatpush.msra.mxu0 %v1694_v7  ;;  %1046 = vmatpush.msra.mxu1 %v1696_v8 }
 0x2c3   :  { %1066 = vmatpush.msra.mxu2 %v1723_v16  ;;  %1086 = vmatpush.msra.mxu3 %v1700_v9 }
 0x2c4   :  { %1027 = vmatpush.msra.mxu0 %v1703_v10  ;;  %1047 = vmatpush.msra.mxu1 %v1705_v11 }
 0x2c5   :  { %1067 = vmatpush.msra.mxu2 %v1727_v17  ;;  %1087 = vmatpush.msra.mxu3 %v1711_v13  ;;  %v697_v13 = vld [vmem:[#allocation4 + $0x90] sm:$0xff] }
 0x339   :  { %v719_v3 = vpop.f32.mrf.mxu0  ;;  %v739_v4 = vpop.f32.mrf.mxu1 }
 0x33a   :  { %v782_v5 = vadd.f32 %v719_v3, %v695_v1  ;;  %v802_v6 = vadd.f32 %v739_v4, %v696_v2  ;;  %v1580_v1 = vld [vmem:[#allocation6 + $0x70] sm:$0xff]  ;;  %v1581_v2 = vld [vmem:[#allocation6 + $0x8] sm:$0xff] }
 0x33b   :  { %v1582_v3 = vld [vmem:[#allocation6 + $0x28] sm:$0xff] }
 0x33c   :  { %v1409_v7 = vmul.f32 -1.442695, %v782_v5  ;;  %v1410_v8 = vmul.f32 -1.442695, %v802_v6  ;;  %v1583_v4 = vld [vmem:[#allocation6 + $0x48] sm:$0xff]  ;;  %v1585_v6 = vld [vmem:[#allocation6] sm:$0xff] }
 0x33d   :  { %v1584_v5 = vld [vmem:[#allocation6 + $0x68] sm:$0xff] }
 0x33e   :  { %1505 = vpow2.f32 %v1409_v7  ;;  %v1586_v7 = vld [vmem:[#allocation6 + $0x20] sm:$0xff] }
 0x33f   :  { %1507 = vpow2.f32 %v1410_v8  ;;  %v1587_v8 = vld [vmem:[#allocation6 + $0x40] sm:$0xff] }
 0x340   :  { %v779_v9 = vpop.f32.mrf.mxu3  ;;  %v759_v56 = vpop.f32.mrf.mxu2 }
 0x341   :  { %v824_v15 = vadd.f32 %v779_v9, %v698_v12  ;;  %v822_v60 = vadd.f32 %v759_v56, %v697_v13  ;;  %v1588_v12 = vld [vmem:[#allocation6 + $0x60] sm:$0xff]  ;;  %v853_v56 = vld [vmem:[#allocation4 + $0xb8] sm:$0xff] }
 0x342   :  { %v850_v9 = vld [vmem:[#allocation4 + $0xa0] sm:$0xff] }
 0x343   :  { %v1411_v10 = vmul.f32 -1.442695, %v824_v15  ;;  %v851_v15 = vld [vmem:[#allocation4 + $0xa8] sm:$0xff] }
 0x344   :  { %v1506_v16 = vpop.eup %1505 }
 0x345   :  { %v1508_v11 = vpop.eup %1507  ;;  %v786_v38 = vadd.f32 1.0, %v1506_v16  ;;  %1509 = vpow2.f32 %v1411_v10 }
 0x346   :  { %v806_v17 = vadd.f32 1.0, %v1508_v11 }
 0x347   :  { %1511 = vrcp.f32 %v786_v38  ;;  %v798_v18 = vand.u32 2147483648, %v786_v38  ;;  %v796_v22 = vand.u32 2147483647, %v786_v38  ;;  %vm792_vm6 = vweird.f32 %v786_v38 }
 0x348   :  { %1513 = vrcp.f32 %v806_v17  ;;  %v818_v20 = vand.u32 2147483648, %v806_v17  ;;  %v816_v24 = vand.u32 2147483647, %v806_v17  ;;  %vm812_vm7 = vweird.f32 %v806_v17 }
 0x349   :  { %v799_v27 = vor.u32 1.1754944e-38, %v798_v18  ;;  %vm797_vm10 = vcmp.eq.f32.partialorder %v796_v22, 8.507059e+37 }
 0x34a   :  { %v819_v31 = vor.u32 1.1754944e-38, %v818_v20  ;;  %vm817_vm11 = vcmp.eq.f32.partialorder %v816_v24, 8.507059e+37 }
 0x34b   :  { %v1510_v57 = vpop.eup %1509 }
 0x34c   :  { %v828_v58 = vadd.f32 1.0, %v1510_v57 }
 0x34d   :  { %v1512_v59 = vpop.eup %1511 }
 0x34e   :  { %v1514_v61 = vpop.eup %1513  ;;  %v788_v62 = vmul.f32 %v1512_v59, %v786_v38  ;;  %1515 = vrcp.f32 %v828_v58  ;;  %vm793_vm4 = vweird.f32 %v1512_v59  ;;  %v840_v43 = vand.u32 2147483648, %v828_v58 }
 0x34f   :  { %v808_v63 = vmul.f32 %v1514_v61, %v806_v17  ;;  %1517 = vtanh.f32 %v822_v60  ;;  %vm813_vm5 = vweird.f32 %v1514_v61  ;;  %vm794_vm8 = vmor %vm792_vm6, %vm793_vm4  ;;  %vm834_vm13 = vweird.f32 %v828_v58 }
 0x350   :  { %v789_v0 = vsub.f32 1.0, %v788_v62  ;;  %vm814_vm9 = vmor %vm812_vm7, %vm813_vm5  ;;  %v838_v44 = vand.u32 2147483647, %v828_v58  ;;  %v841_v46 = vor.u32 1.1754944e-38, %v840_v43 }
 0x351   :  { %v809_v14 = vsub.f32 1.0, %v808_v63 }
 0x352   :  { %v790_v21 = vmul.f32 %v1512_v59, %v789_v0  ;;  %vm839_vm15 = vcmp.eq.f32.partialorder %v838_v44, 8.507059e+37  ;;  %v852_v0 = vld [vmem:[#allocation4 + $0xb0] sm:$0xff] }
 0x353   :  { %v810_v23 = vmul.f32 %v1514_v61, %v809_v14 }
 0x354   :  { %v1516_v25 = vpop.eup %1515  ;;  %v791_v26 = vadd.f32 %v1512_v59, %v790_v21 }
 0x355   :  { %v811_v28 = vadd.f32 %v1514_v61, %v810_v23  ;;  %v830_v30 = vmul.f32 %v1516_v25, %v828_v58  ;;  %v1518_v33 = vpop.eup %1517  ;;  %vm835_vm12 = vweird.f32 %v1516_v25 }
 0x356   :  { %v795_v32 = vsel %vm794_vm8, %v1512_v59, %v791_v26  ;;  %vm836_vm14 = vmor %vm834_vm13, %vm835_vm12 }
 0x357   :  { %v800_v34 = vsel %vm797_vm10, %v799_v27, %v795_v32  ;;  %v815_v35 = vsel %vm814_vm9, %v1514_v61, %v811_v28  ;;  %v831_v36 = vsub.f32 1.0, %v830_v30 }
 0x358   :  { %v820_v37 = vsel %vm817_vm11, %v819_v31, %v815_v35  ;;  %v845_v19 = vmul.f32 %v1518_v33, %v800_v34 }
 0x359   :  { %v844_v39 = vmul.f32 %v820_v37, %v1835_v47  ;;  %v832_v40 = vmul.f32 %v1516_v25, %v831_v36  ;;  %v1573_v47 = vld [vmem:[#allocation6 + $0x18] sm:$0xff] }
 0x35b   :  { %v1859_v41 = vadd.f32 %v845_v19, %v844_v39  ;;  %v833_v42 = vadd.f32 %v1516_v25, %v832_v40 }
 0x35d   :  { %1519 = vtanh.f32 %v1859_v41  ;;  %v837_v45 = vsel %vm836_vm14, %v1516_v25, %v833_v42 }
 0x35e   :  { %v842_v48 = vsel %vm839_vm15, %v841_v46, %v837_v45 }
 0x363   :  { %v1520_v29 = vpop.eup %1519 }
 0x364   :  { %v848_v49 = vmul.f32 %v1520_v29, %v842_v48 }
 0x366   :  { %1412 = vmatmul.msk.f32.vlgmr.msrb.gmra.mxu0 %vm53_vm0, %v848_v49  ;;  %1413 = vmatmul.msk.f32.vlgmr.msrb.gmra.mxu1 %vm53_vm0, %v848_v49 }
 0x367   :  { %1414 = vmatmul.msk.f32.vlgmr.msrb.gmra.mxu2 %vm53_vm0, %v848_v49  ;;  %1415 = vmatmul.msk.f32.vlgmr.msrb.gmra.mxu3 %vm53_vm0, %v848_v49 }
 0x368   :  { %1179 = vmatpush.msrb.mxu0 %v1573_v47  ;;  %1199 = vmatpush.msrb.mxu1 %v1574_v50 }
 0x369   :  { %1219 = vmatpush.msrb.mxu2 %v1575_v51  ;;  %1239 = vmatpush.msrb.mxu3 %v1576_v52 }
 0x36a   :  { %1180 = vmatpush.msrb.mxu0 %v1577_v53  ;;  %1200 = vmatpush.msrb.mxu1 %v1578_v54 }
 0x36b   :  { %1220 = vmatpush.msrb.mxu2 %v1579_v55  ;;  %1240 = vmatpush.msrb.mxu3 %v1580_v1 }
 0x36c   :  { %1181 = vmatpush.msrb.mxu0 %v1581_v2  ;;  %1201 = vmatpush.msrb.mxu1 %v1582_v3 }
 0x36d   :  { %1221 = vmatpush.msrb.mxu2 %v1583_v4  ;;  %1241 = vmatpush.msrb.mxu3 %v1584_v5  ;;  %v1006_v4 = vld [vmem:[#allocation4 + $0xc8] sm:$0xff] }
 0x36e   :  { %1182 = vmatpush.msrb.mxu0 %v1585_v6  ;;  %1202 = vmatpush.msrb.mxu1 %v1586_v7 }
 0x36f   :  { %1222 = vmatpush.msrb.mxu2 %v1587_v8  ;;  %1242 = vmatpush.msrb.mxu3 %v1588_v12 }
 0x3e3   :  { %v874_v10 = vpop.f32.mrf.mxu0  ;;  %v894_v16 = vpop.f32.mrf.mxu1 }
 0x3e4   :  { %v937_v11 = vadd.f32 %v874_v10, %v850_v9  ;;  %v957_v38 = vadd.f32 %v894_v16, %v851_v15  ;;  %v1008_v15 = vld [vmem:[#allocation4 + $0xd8] sm:$0xff] }
 0x3e6   :  { %v1416_v17 = vmul.f32 -1.442695, %v937_v11  ;;  %v1417_v13 = vmul.f32 -1.442695, %v957_v38 }
 0x3e8   :  { %1521 = vpow2.f32 %v1416_v17 }
 0x3e9   :  { %1523 = vpow2.f32 %v1417_v13 }
 0x3ea   :  { %v934_v57 = vpop.f32.mrf.mxu3  ;;  %v914_v14 = vpop.f32.mrf.mxu2 }
 0x3eb   :  { %v979_v58 = vadd.f32 %v934_v57, %v853_v56  ;;  %v977_v22 = vadd.f32 %v914_v14, %v852_v0  ;;  %v1007_v57 = vld [vmem:[#allocation4 + $0xd0] sm:$0xff] }
 0x3ed   :  { %v1418_v59 = vmul.f32 -1.442695, %v979_v58 }
 0x3ee   :  { %v1522_v60 = vpop.eup %1521 }
 0x3ef   :  { %v1524_v61 = vpop.eup %1523  ;;  %v941_v62 = vadd.f32 1.0, %v1522_v60  ;;  %1525 = vpow2.f32 %v1418_v59 }
 0x3f0   :  { %v961_v63 = vadd.f32 1.0, %v1524_v61 }
 0x3f1   :  { %1527 = vrcp.f32 %v941_v62  ;;  %v953_v28 = vand.u32 2147483648, %v941_v62  ;;  %v951_v32 = vand.u32 2147483647, %v941_v62  ;;  %vm947_vm3 = vweird.f32 %v941_v62 }
 0x3f2   :  { %1529 = vrcp.f32 %v961_v63  ;;  %v973_v30 = vand.u32 2147483648, %v961_v63  ;;  %v971_v34 = vand.u32 2147483647, %v961_v63  ;;  %vm967_vm4 = vweird.f32 %v961_v63 }
 0x3f3   :  { %v954_v37 = vor.u32 1.1754944e-38, %v953_v28  ;;  %vm952_vm7 = vcmp.eq.f32.partialorder %v951_v32, 8.507059e+37 }
 0x3f4   :  { %v974_v40 = vor.u32 1.1754944e-38, %v973_v30  ;;  %vm972_vm8 = vcmp.eq.f32.partialorder %v971_v34, 8.507059e+37 }
 0x3f5   :  { %v1526_v18 = vpop.eup %1525 }
 0x3f6   :  { %v983_v20 = vadd.f32 1.0, %v1526_v18 }
 0x3f7   :  { %v1528_v21 = vpop.eup %1527 }
 0x3f8   :  { %v1530_v23 = vpop.eup %1529  ;;  %v943_v24 = vmul.f32 %v1528_v21, %v941_v62  ;;  %1531 = vrcp.f32 %v983_v20  ;;  %vm948_vm1 = vweird.f32 %v1528_v21  ;;  %v995_v52 = vand.u32 2147483648, %v983_v20 }
 0x3f9   :  { %v963_v25 = vmul.f32 %v1530_v23, %v961_v63  ;;  %1533 = vtanh.f32 %v977_v22  ;;  %vm968_vm2 = vweird.f32 %v1530_v23  ;;  %vm949_vm5 = vmor %vm947_vm3, %vm948_vm1  ;;  %vm989_vm10 = vweird.f32 %v983_v20 }
 0x3fa   :  { %v944_v26 = vsub.f32 1.0, %v943_v24  ;;  %vm969_vm6 = vmor %vm967_vm4, %vm968_vm2  ;;  %v993_v53 = vand.u32 2147483647, %v983_v20  ;;  %v996_v55 = vor.u32 1.1754944e-38, %v995_v52 }
 0x3fb   :  { %v964_v27 = vsub.f32 1.0, %v963_v25 }
 0x3fc   :  { %v945_v31 = vmul.f32 %v1528_v21, %v944_v26  ;;  %vm994_vm12 = vcmp.eq.f32.partialorder %v993_v53, 8.507059e+37  ;;  %v1161_v53 = vld [vmem:[#allocation4 + $0xe8] sm:$0xff] }
 0x3fd   :  { %v965_v33 = vmul.f32 %v1530_v23, %v964_v27 }
 0x3fe   :  { %v1532_v35 = vpop.eup %1531  ;;  %v946_v36 = vadd.f32 %v1528_v21, %v945_v31 }
 0x3ff   :  { %v966_v19 = vadd.f32 %v1530_v23, %v965_v33  ;;  %v985_v39 = vmul.f32 %v1532_v35, %v983_v20  ;;  %v1534_v43 = vpop.eup %1533  ;;  %vm990_vm9 = vweird.f32 %v1532_v35 }
 0x400   :  { %v950_v42 = vsel %vm949_vm5, %v1528_v21, %v946_v36  ;;  %vm991_vm11 = vmor %vm989_vm10, %vm990_vm9 }
 0x401   :  { %v955_v44 = vsel %vm952_vm7, %v954_v37, %v950_v42  ;;  %v970_v45 = vsel %vm969_vm6, %v1530_v23, %v966_v19  ;;  %v986_v46 = vsub.f32 1.0, %v985_v39 }
 0x402   :  { %v975_v29 = vsel %vm972_vm8, %v974_v40, %v970_v45  ;;  %v1000_v48 = vmul.f32 %v1534_v43, %v955_v44 }
 0x403   :  { %v999_v49 = vmul.f32 %v975_v29, %v1859_v41  ;;  %v987_v47 = vmul.f32 %v1532_v35, %v986_v46  ;;  %v1005_v41 = vld [vmem:[#allocation4 + $0xc0] sm:$0xff] }
 0x405   :  { %v1867_v50 = vadd.f32 %v1000_v48, %v999_v49  ;;  %v988_v51 = vadd.f32 %v1532_v35, %v987_v47 }
 0x407   :  { %1535 = vtanh.f32 %v1867_v50  ;;  %v992_v54 = vsel %vm991_vm11, %v1532_v35, %v988_v51 }
 0x408   :  { %v997_v2 = vsel %vm994_vm12, %v996_v55, %v992_v54 }
 0x40d   :  { %v1536_v1 = vpop.eup %1535 }
 0x40e   :  { %v1003_v3 = vmul.f32 %v1536_v1, %v997_v2 }
 0x410   :  { %1419 = vmatmul.msk.f32.vlgmr.msra.gmra.mxu0 %vm53_vm0, %v1003_v3  ;;  %1420 = vmatmul.msk.f32.vlgmr.msra.gmra.mxu1 %vm53_vm0, %v1003_v3 }
 0x411   :  { %1421 = vmatmul.msk.f32.vlgmr.msra.gmra.mxu2 %vm53_vm0, %v1003_v3  ;;  %1422 = vmatmul.msk.f32.vlgmr.msra.gmra.mxu3 %vm53_vm0, %v1003_v3 }
 0x48d   :  { %v1029_v5 = vpop.f32.mrf.mxu0  ;;  %v1049_v6 = vpop.f32.mrf.mxu1 }
 0x48e   :  { %v1092_v7 = vadd.f32 %v1029_v5, %v1005_v41  ;;  %v1112_v8 = vadd.f32 %v1049_v6, %v1006_v4  ;;  %v1322_v4 = vld [vmem:[%s1906_s2 + $0x18] sm:$0xff]  ;;  %v1321_v5 = vld [vmem:[%s1906_s2 + $0x10] sm:$0xff]  ;;  %v1163_v6 = vld [vmem:[#allocation4 + $0xf8] sm:$0xff] }
 0x48f   :  { %1342 = vmatpush.msra.mxu0 %v1322_v4 }
 0x490   :  { %v1423_v12 = vmul.f32 -1.442695, %v1092_v7  ;;  %v1424_v9 = vmul.f32 -1.442695, %v1112_v8  ;;  %v1320_v7 = vld [vmem:[%s1906_s2 + $0x8] sm:$0xff] }
 0x491   :  { %1343 = vmatpush.msra.mxu0 %v1321_v5 }
 0x492   :  { %1537 = vpow2.f32 %v1423_v12 }
 0x493   :  { %1539 = vpow2.f32 %v1424_v9  ;;  %v1319_v9 = vld [vmem:[%s1906_s2] sm:$0xff]  ;;  %1344 = vmatpush.msra.mxu0 %v1320_v7 }
 0x494   :  { %v1089_v10 = vpop.f32.mrf.mxu3  ;;  %v1069_v58 = vpop.f32.mrf.mxu2 }
 0x495   :  { %v1134_v16 = vadd.f32 %v1089_v10, %v1008_v15  ;;  %v1132_v62 = vadd.f32 %v1069_v58, %v1007_v57  ;;  %1345 = vmatpush.msra.mxu0 %v1319_v9 }
 0x497   :  { %v1425_v11 = vmul.f32 -1.442695, %v1134_v16 }
 0x498   :  { %v1538_v38 = vpop.eup %1537 }
 0x499   :  { %v1540_v17 = vpop.eup %1539  ;;  %v1096_v13 = vadd.f32 1.0, %v1538_v38  ;;  %1541 = vpow2.f32 %v1425_v11 }
 0x49a   :  { %v1116_v56 = vadd.f32 1.0, %v1540_v17  ;;  %v1162_v17 = vld [vmem:[#allocation4 + $0xf0] sm:$0xff] }
 0x49b   :  { %1543 = vrcp.f32 %v1096_v13  ;;  %v1108_v21 = vand.u32 2147483648, %v1096_v13  ;;  %v1106_v24 = vand.u32 2147483647, %v1096_v13  ;;  %vm1102_vm15 = vweird.f32 %v1096_v13 }
 0x49c   :  { %1545 = vrcp.f32 %v1116_v56  ;;  %v1128_v22 = vand.u32 2147483648, %v1116_v56  ;;  %v1126_v26 = vand.u32 2147483647, %v1116_v56  ;;  %vm1122_vm1 = vweird.f32 %v1116_v56 }
 0x49d   :  { %v1109_v30 = vor.u32 1.1754944e-38, %v1108_v21  ;;  %vm1107_vm4 = vcmp.eq.f32.partialorder %v1106_v24, 8.507059e+37 }
 0x49e   :  { %v1129_v33 = vor.u32 1.1754944e-38, %v1128_v22  ;;  %vm1127_vm5 = vcmp.eq.f32.partialorder %v1126_v26, 8.507059e+37 }
 0x49f   :  { %v1542_v59 = vpop.eup %1541 }
 0x4a0   :  { %v1138_v60 = vadd.f32 1.0, %v1542_v59 }
 0x4a1   :  { %v1544_v61 = vpop.eup %1543 }
 0x4a2   :  { %v1546_v63 = vpop.eup %1545  ;;  %v1098_v0 = vmul.f32 %v1544_v61, %v1096_v13  ;;  %1547 = vrcp.f32 %v1138_v60  ;;  %vm1103_vm13 = vweird.f32 %v1544_v61  ;;  %v1150_v46 = vand.u32 2147483648, %v1138_v60 }
 0x4a3   :  { %v1118_v14 = vmul.f32 %v1546_v63, %v1116_v56  ;;  %1549 = vtanh.f32 %v1132_v62  ;;  %vm1123_vm14 = vweird.f32 %v1546_v63  ;;  %vm1104_vm2 = vmor %vm1102_vm15, %vm1103_vm13  ;;  %vm1144_vm7 = vweird.f32 %v1138_v60 }
 0x4a4   :  { %v1099_v18 = vsub.f32 1.0, %v1098_v0  ;;  %vm1124_vm3 = vmor %vm1122_vm1, %vm1123_vm14  ;;  %v1148_v29 = vand.u32 2147483647, %v1138_v60  ;;  %v1151_v49 = vor.u32 1.1754944e-38, %v1150_v46 }
 0x4a5   :  { %v1119_v20 = vsub.f32 1.0, %v1118_v14 }
 0x4a6   :  { %v1100_v23 = vmul.f32 %v1544_v61, %v1099_v18  ;;  %vm1149_vm9 = vcmp.eq.f32.partialorder %v1148_v29, 8.507059e+37 }
 0x4a7   :  { %v1120_v25 = vmul.f32 %v1546_v63, %v1119_v20 }
 0x4a8   :  { %v1548_v27 = vpop.eup %1547  ;;  %v1101_v28 = vadd.f32 %v1544_v61, %v1100_v23 }
 0x4a9   :  { %v1121_v31 = vadd.f32 %v1546_v63, %v1120_v25  ;;  %v1140_v32 = vmul.f32 %v1548_v27, %v1138_v60  ;;  %v1550_v35 = vpop.eup %1549  ;;  %vm1145_vm6 = vweird.f32 %v1548_v27 }
 0x4aa   :  { %v1105_v34 = vsel %vm1104_vm2, %v1544_v61, %v1101_v28  ;;  %vm1146_vm8 = vmor %vm1144_vm7, %vm1145_vm6 }
 0x4ab   :  { %v1110_v36 = vsel %vm1107_vm4, %v1109_v30, %v1105_v34  ;;  %v1125_v37 = vsel %vm1124_vm3, %v1546_v63, %v1121_v31  ;;  %v1141_v19 = vsub.f32 1.0, %v1140_v32 }
 0x4ac   :  { %v1130_v39 = vsel %vm1127_vm5, %v1129_v33, %v1125_v37  ;;  %v1155_v40 = vmul.f32 %v1550_v35, %v1110_v36 }
 0x4ad   :  { %v1154_v42 = vmul.f32 %v1130_v39, %v1867_v50  ;;  %v1142_v43 = vmul.f32 %v1548_v27, %v1141_v19  ;;  %v1160_v50 = vld [vmem:[#allocation4 + $0xe0] sm:$0xff] }
 0x4af   :  { %v1875_v44 = vadd.f32 %v1155_v40, %v1154_v42  ;;  %v1143_v45 = vadd.f32 %v1548_v27, %v1142_v43 }
 0x4b1   :  { %1551 = vtanh.f32 %v1875_v44  ;;  %v1147_v48 = vsel %vm1146_vm8, %v1548_v27, %v1143_v45 }
 0x4b2   :  { %v1152_v51 = vsel %vm1149_vm9, %v1151_v49, %v1147_v48  ;;  %vm1369_vm9 = vcmask 15360  }
 0x4b7   :  { %v1552_v47 = vpop.eup %1551 }
 0x4b8   :  { %v1158_v52 = vmul.f32 %v1552_v47, %v1152_v51 }
 0x4ba   :  { %1426 = vmatmul.msk.f32.vlgmr.msrb.gmra.mxu0 %vm53_vm0, %v1158_v52  ;;  %1427 = vmatmul.msk.f32.vlgmr.msrb.gmra.mxu1 %vm53_vm0, %v1158_v52 }
 0x4bb   :  { %1428 = vmatmul.msk.f32.vlgmr.msrb.gmra.mxu2 %vm53_vm0, %v1158_v52  ;;  %1429 = vmatmul.msk.f32.vlgmr.msrb.gmra.mxu3 %vm53_vm0, %v1158_v52 }
 0x537   :  { %v1184_v54 = vpop.f32.mrf.mxu0  ;;  %v1204_v55 = vpop.f32.mrf.mxu1 }
 0x538   :  { %v1247_v1 = vadd.f32 %v1184_v54, %v1160_v50  ;;  %v1267_v2 = vadd.f32 %v1204_v55, %v1161_v53 }
 0x53a   :  { %v1430_v3 = vmul.f32 -1.442695, %v1247_v1  ;;  %v1431_v41 = vmul.f32 -1.442695, %v1267_v2 }
 0x53c   :  { %1553 = vpow2.f32 %v1430_v3 }
 0x53d   :  { %1555 = vpow2.f32 %v1431_v41 }
 0x53e   :  { %v1244_v8 = vpop.f32.mrf.mxu3  ;;  %v1224_v13 = vpop.f32.mrf.mxu2 }
 0x53f   :  { %v1289_v12 = vadd.f32 %v1244_v8, %v1163_v6  ;;  %v1287_v59 = vadd.f32 %v1224_v13, %v1162_v17 }
 0x541   :  { %v1432_v15 = vmul.f32 -1.442695, %v1289_v12 }
 0x542   :  { %v1554_v10 = vpop.eup %1553 }
 0x543   :  { %v1556_v16 = vpop.eup %1555  ;;  %v1251_v11 = vadd.f32 1.0, %v1554_v10  ;;  %1557 = vpow2.f32 %v1432_v15 }
 0x544   :  { %v1271_v38 = vadd.f32 1.0, %v1556_v16 }
 0x545   :  { %1559 = vrcp.f32 %v1251_v11  ;;  %v1263_v14 = vand.u32 2147483648, %v1251_v11  ;;  %v1261_v21 = vand.u32 2147483647, %v1251_v11  ;;  %vm1257_vm12 = vweird.f32 %v1251_v11 }
 0x546   :  { %1561 = vrcp.f32 %v1271_v38  ;;  %v1283_v18 = vand.u32 2147483648, %v1271_v38  ;;  %v1281_v23 = vand.u32 2147483647, %v1271_v38  ;;  %vm1277_vm13 = vweird.f32 %v1271_v38 }
 0x547   :  { %v1264_v26 = vor.u32 1.1754944e-38, %v1263_v14  ;;  %vm1262_vm1 = vcmp.eq.f32.partialorder %v1261_v21, 8.507059e+37 }
 0x548   :  { %v1284_v30 = vor.u32 1.1754944e-38, %v1283_v18  ;;  %vm1282_vm2 = vcmp.eq.f32.partialorder %v1281_v23, 8.507059e+37 }
 0x549   :  { %v1558_v56 = vpop.eup %1557 }
 0x54a   :  { %v1293_v57 = vadd.f32 1.0, %v1558_v56 }
 0x54b   :  { %v1560_v58 = vpop.eup %1559 }
 0x54c   :  { %v1562_v60 = vpop.eup %1561  ;;  %v1253_v61 = vmul.f32 %v1560_v58, %v1251_v11  ;;  %1563 = vrcp.f32 %v1293_v57  ;;  %vm1258_vm10 = vweird.f32 %v1560_v58  ;;  %v1305_v43 = vand.u32 2147483648, %v1293_v57 }
 0x54d   :  { %v1273_v62 = vmul.f32 %v1562_v60, %v1271_v38  ;;  %1565 = vtanh.f32 %v1287_v59  ;;  %vm1278_vm11 = vweird.f32 %v1562_v60  ;;  %vm1259_vm14 = vmor %vm1257_vm12, %vm1258_vm10  ;;  %vm1299_vm4 = vweird.f32 %v1293_v57 }
 0x54e   :  { %v1254_v63 = vsub.f32 1.0, %v1253_v61  ;;  %vm1279_vm15 = vmor %vm1277_vm13, %vm1278_vm11  ;;  %v1303_v45 = vand.u32 2147483647, %v1293_v57  ;;  %v1306_v29 = vor.u32 1.1754944e-38, %v1305_v43 }
 0x54f   :  { %v1274_v0 = vsub.f32 1.0, %v1273_v62 }
 0x550   :  { %v1255_v20 = vmul.f32 %v1560_v58, %v1254_v63  ;;  %vm1304_vm6 = vcmp.eq.f32.partialorder %v1303_v45, 8.507059e+37 }
 0x551   :  { %v1275_v22 = vmul.f32 %v1562_v60, %v1274_v0 }
 0x552   :  { %v1564_v24 = vpop.eup %1563  ;;  %v1256_v25 = vadd.f32 %v1560_v58, %v1255_v20 }
 0x553   :  { %v1276_v27 = vadd.f32 %v1562_v60, %v1275_v22  ;;  %v1295_v28 = vmul.f32 %v1564_v24, %v1293_v57  ;;  %v1566_v32 = vpop.eup %1565  ;;  %vm1300_vm3 = vweird.f32 %v1564_v24 }
 0x554   :  { %v1260_v31 = vsel %vm1259_vm14, %v1560_v58, %v1256_v25  ;;  %vm1301_vm5 = vmor %vm1299_vm4, %vm1300_vm3 }
 0x555   :  { %v1265_v33 = vsel %vm1262_vm1, %v1264_v26, %v1260_v31  ;;  %v1280_v34 = vsel %vm1279_vm15, %v1562_v60, %v1276_v27  ;;  %v1296_v35 = vsub.f32 1.0, %v1295_v28 }
 0x556   :  { %v1285_v36 = vsel %vm1282_vm2, %v1284_v30, %v1280_v34  ;;  %v1310_v37 = vmul.f32 %v1566_v32, %v1265_v33 }
 0x557   :  { %v1309_v19 = vmul.f32 %v1285_v36, %v1875_v44  ;;  %v1297_v39 = vmul.f32 %v1564_v24, %v1296_v35  ;;  %v1440_v44 = vld [vmem:[%s1907_s3] ss:$0 sm:$0xff] }
 0x559   :  { %v1311_v40 = vadd.f32 %v1310_v37, %v1309_v19  ;;  %v1298_v42 = vadd.f32 %v1564_v24, %v1297_v39 }
 0x55b   :  { %1567 = vtanh.f32 %v1311_v40  ;;  %1315 = vst.msk [vmem:[#allocation3] sm:$0xff] %vm53_vm0, %v1311_v40  ;;  %v1302_v46 = vsel %vm1301_vm5, %v1564_v24, %v1298_v42 }
 0x55c   :  { %v1307_v49 = vsel %vm1304_vm6, %v1306_v29, %v1302_v46 }
 0x561   :  { %v1568_v48 = vpop.eup %1567 }
 0x562   :  { %v1313_v47 = vmul.f32 %v1568_v48, %v1307_v49 }
 0x564   :  { %1314 = vst.msk [vmem:[#allocation2] sm:$0xff] %vm53_vm0, %v1313_v47  ;;  %1433 = vmatmul.msk.f32.vlgmr.msra.gmra.mxu0 %vm53_vm0, %v1313_v47 }
 0x5e1   :  { %v1347_v51 = vpop.f32.mrf.mxu0 }
 0x5e2   :  { %v1348_v52 = vadd.f32 %v1440_v44, %v1347_v51 }
 0x5e4   :  { %v1434_v50 = vmul.f32 -1.442695, %v1348_v52 }
 0x5e6   :  { %1569 = vpow2.f32 %v1434_v50 }
 0x5ec   :  { %v1570_v53 = vpop.eup %1569 }
 0x5ed   :  { %v1353_v54 = vadd.f32 1.0, %v1570_v53 }
 0x5ef   :  { %1571 = vrcp.f32 %v1353_v54  ;;  %v1365_v3 = vand.u32 2147483648, %v1353_v54  ;;  %v1363_v4 = vand.u32 2147483647, %v1353_v54  ;;  %vm1359_vm0 = vweird.f32 %v1353_v54 }
 0x5f1   :  { %v1366_v6 = vor.u32 1.1754944e-38, %v1365_v3  ;;  %vm1364_vm10 = vcmp.eq.f32.partialorder %v1363_v4, 8.507059e+37 }
 0x5f5   :  { %v1572_v55 = vpop.eup %1571 }
 0x5f6   :  { %v1355_v1 = vmul.f32 %v1572_v55, %v1353_v54  ;;  %vm1360_vm7 = vweird.f32 %v1572_v55 }
 0x5f7   :  { %vm1361_vm8 = vmor %vm1359_vm0, %vm1360_vm7 }
 0x5f8   :  { %v1356_v2 = vsub.f32 1.0, %v1355_v1 }
 0x5fa   :  { %v1357_v41 = vmul.f32 %v1572_v55, %v1356_v2 }
 0x5fc   :  { %v1358_v5 = vadd.f32 %v1572_v55, %v1357_v41 }
 0x5fe   :  { %v1362_v7 = vsel %vm1361_vm8, %v1572_v55, %v1358_v5 }
 0x5ff   :  { %v1367_v8 = vsel %vm1364_vm10, %v1366_v6, %v1362_v7 }
 0x600   :  { %1370 = vst.msk [vmem:[%s1908_s4] sm:$0xff] %vm1369_vm9, %v1367_v8 }
 0x601   :  { %1375 = vsyncpa [#allocation5], 1 }
 0x602   :  { %1376 = vsyncpa [#allocation7], 1 }

</bundles_post_ra>
